<compile_context>
chip_gen: v7x
topology: tpu7x:2x2x1
jax: 0.10.0
libtpu: 0.0.40
codegen_flags: <defaults>
</compile_context>

<pallas_src>
import functools

import jax
import jax.numpy as jnp
from jax import lax
from jax.experimental import pallas as pl
from jax.experimental.pallas import tpu as pltpu


def _round_up(x, m):
    return ((x + m - 1) // m) * m


def _dagnn_kernel(a_ref, x_ref, b_ref, out_ref, h_ref, hacc_ref, *,
                  gate_col, a_resident):
    """Grid = (K, row tiles, contraction tiles).

    a_ref:    resident: [NT*N_pad, T] column-block-major A_hat (VMEM, fetched once)
              streamed: [T, T] A_hat block for (row tile i, col tile j)
    x_ref:    [N_pad, F_pad]   bf16/f32  augmented input [x | x@w | 0], VMEM resident
    b_ref:    [1, 1]           f32       gate bias (SMEM)
    out_ref:  [N_pad, F_pad]   f32       resident accumulator  sum_k s_k * H_k
    h_ref:    [2*N_pad, F_pad] bf16/f32  ping-pong buffers for H_{k-1} / H_k
    hacc_ref: [T, F_pad]       f32       per-row-tile contraction accumulator
    """
    k = pl.program_id(0)
    i = pl.program_id(1)
    j = pl.program_id(2)
    nj = pl.num_programs(2)

    tile = a_ref.shape[-1]
    n_pad = x_ref.shape[0]

    # One-time seed: H_0 = [x | x@w | 0] into the "previous" ping-pong buffer.
    @pl.when((k == 0) & (i == 0) & (j == 0))
    def _seed():
        h_ref[pl.ds(n_pad, n_pad), :] = x_ref[...]

    # A_hat tile (i, j): slice out of the VMEM-resident copy, or use the streamed block.
    if a_resident:
        a_off = pl.multiple_of(j * n_pad + i * tile, tile)
        a_tile = a_ref[pl.ds(a_off, tile), :]
    else:
        a_tile = a_ref[...]

    # Partial product A[i, j] @ H_{k-1}[rows of tile j], f32 accumulation on the MXU.
    read_off = pl.multiple_of(lax.rem(k + 1, 2) * n_pad + j * tile, tile)
    partial = jnp.dot(a_tile, h_ref[pl.ds(read_off, tile), :],
                      preferred_element_type=jnp.float32)

    @pl.when(j == 0)
    def _init_acc():                 # overwrite: avoids zero-fill + read-modify-write
        hacc_ref[...] = partial

    @pl.when(j > 0)
    def _acc():
        hacc_ref[...] += partial

    # Contraction done for this row tile: store H_k rows, gate, accumulate output.
    @pl.when(j == nj - 1)
    def _finalize():
        b = b_ref[0, 0]
        h_new = hacc_ref[...]                                       # f32 [T, F_pad]
        row_off = pl.multiple_of(i * tile, tile)
        write_off = pl.multiple_of(lax.rem(k, 2) * n_pad + i * tile, tile)

        # Stash H_k (augmented, incl. its gate column) for the next propagation step.
        h_ref[pl.ds(write_off, tile), :] = h_new.astype(h_ref.dtype)

        # Gate score = the augmented column (== H_k @ w), no cross-lane reduction.
        s_k = jax.nn.sigmoid(h_new[:, gate_col:gate_col + 1] + b)   # [T, 1]
        term = s_k * h_new

        @pl.when(k == 0)
        def _init_out():  # fold in the k=0 term (s_0 * x) and initialize the window
            x_rows = x_ref[pl.ds(row_off, tile), :].astype(jnp.float32)
            s_0 = jax.nn.sigmoid(x_rows[:, gate_col:gate_col + 1] + b)
            out_ref[pl.ds(row_off, tile), :] = s_0 * x_rows + term

        @pl.when(k > 0)
        def _acc_out():
            out_ref[pl.ds(row_off, tile), :] += term


def dagnn_conv_pallas(x, a_hat, weight, bias, *, K, tile=512,
                      compute_dtype=jnp.bfloat16, a_in_vmem=None,
                      vmem_budget_bytes=40 << 20):
    """x: [N, F] f32, a_hat: [N, N] f32, weight: [1, F] f32, bias: [1, 1] f32.

    a_in_vmem: True  -> keep A_hat VMEM-resident (HBM-read once, best when it fits),
               False -> stream (tile, tile) blocks each propagation step,
               None  -> auto-select from a conservative VMEM budget.
    """
    assert K >= 1
    N, F = x.shape

    # Pad features to a lane-dense multiple of 128, reserving one column (index F)
    # for the gate score H @ w that rides along through the propagation matmul.
    f_pad = _round_up(F + 1, 128)
    tile = _round_up(max(128, min(tile, _round_up(N, 128))), 128)
    n_pad = _round_up(N, tile)
    n_tiles = n_pad // tile

    x = x.astype(jnp.float32)
    a_hat = a_hat.astype(jnp.float32)
    w = weight.reshape(F).astype(jnp.float32)
    b = jnp.asarray(bias, jnp.float32).reshape(1, 1)

    # Augmented, zero-padded features: [x | x@w | 0].
    x_aug = jnp.zeros((n_pad, f_pad), jnp.float32)
    x_aug = x_aug.at[:N, :F].set(x)
    x_aug = x_aug.at[:N, F].set(x @ w)
    x_aug = x_aug.astype(compute_dtype)

    # Column-block-major A_hat: a_cb[j*n_pad + r, c] = A_hat[r, j*tile + c].
    # Every (tile, tile) block — and the full resident copy — is contiguous in HBM.
    a_pad = jnp.zeros((n_pad, n_pad), jnp.float32).at[:N, :N].set(a_hat)
    a_cb = (a_pad.reshape(n_pad, n_tiles, tile)
            .transpose(1, 0, 2)
            .reshape(n_tiles * n_pad, tile)
            .astype(compute_dtype))

    itemsize = jnp.dtype(compute_dtype).itemsize
    common_bytes = (2 * n_pad * f_pad * itemsize     # resident x_aug (double buffered)
                    + 2 * n_pad * f_pad * 4          # resident f32 output
                    + 2 * n_pad * f_pad * itemsize   # H ping-pong scratch
                    + tile * f_pad * 4)              # f32 contraction scratch
    resident_bytes = common_bytes + 2 * n_pad * n_pad * itemsize
    streamed_bytes = common_bytes + 2 * tile * tile * itemsize

    if a_in_vmem is None:
        a_in_vmem = resident_bytes <= vmem_budget_bytes
    vmem_bytes = resident_bytes if a_in_vmem else streamed_bytes
    if vmem_bytes > (56 << 20):
        raise ValueError(
            f"DAGNN kernel needs ~{vmem_bytes >> 20} MiB VMEM; reduce N or tile "
            f"(or force a_in_vmem=False).")
    vmem_limit = int(min(max(vmem_bytes + (8 << 20), 32 << 20), 64 << 20))

    a_hbm_reads = 1 if a_in_vmem else K
    cost = pl.CostEstimate(
        flops=2 * K * n_pad * n_pad * f_pad + 4 * (K + 1) * n_pad * f_pad,
        transcendentals=(K + 1) * n_pad,
        bytes_accessed=(a_hbm_reads * n_pad * n_pad * itemsize
                        + n_pad * f_pad * (itemsize + 4)),
    )

    if a_in_vmem:
        # Constant block index -> A_hat DMA'd to VMEM exactly once, K-independent.
        a_spec = pl.BlockSpec((n_tiles * n_pad, tile), lambda k, i, j: (0, 0))
    else:
        # Contiguous (tile, tile) block for (row tile i, col tile j), streamed per step.
        a_spec = pl.BlockSpec((tile, tile), lambda k, i, j: (j * n_tiles + i, 0))

    grid_spec = pltpu.PrefetchScalarGridSpec(
        num_scalar_prefetch=0,
        grid=(K, n_tiles, n_tiles),                 # contraction axis last
        in_specs=[
            a_spec,                                               # A_hat
            pl.BlockSpec((n_pad, f_pad), lambda k, i, j: (0, 0)),  # x_aug, resident
            pl.BlockSpec(memory_space=pltpu.MemorySpace.SMEM),     # bias scalar
        ],
        out_specs=pl.BlockSpec((n_pad, f_pad), lambda k, i, j: (0, 0)),  # resident acc
        scratch_shapes=[
            pltpu.VMEM((2 * n_pad, f_pad), compute_dtype),   # H ping-pong
            pltpu.VMEM((tile, f_pad), jnp.float32),          # contraction accumulator
        ],
    )

    kernel = functools.partial(_dagnn_kernel, gate_col=F, a_resident=bool(a_in_vmem))
    out = pl.pallas_call(
        kernel,
        out_shape=jax.ShapeDtypeStruct((n_pad, f_pad), jnp.float32),
        grid_spec=grid_spec,
        compiler_params=pltpu.CompilerParams(
            # TODO(synk): sharding the row-tile axis across v7x's two TensorCores
            # requires staging H_k through HBM/VMEM_SHARED + core barriers (every core
            # needs all rows of H_{k-1}); kept sequential so the per-core VMEM
            # ping-pong stays correct.
            dimension_semantics=("arbitrary", "arbitrary", "arbitrary"),
            vmem_limit_bytes=vmem_limit,
        ),
        cost_estimate=cost,
    )(a_cb, x_aug, b)
    return out[:N, :F]


def build_gcn_adjacency(edge_index, edge_weight, num_nodes):
    """Dense A_hat = D^-1/2 (A + I) D^-1/2 (append self loops, then GCN norm)."""
    src, dst = edge_index[0], edge_index[1]
    A = jnp.zeros((num_nodes, num_nodes), jnp.float32)
    # spmm convention: out[i] = sum_j A[i, j] * x[j] with A[dst, src] = w
    A = A.at[dst, src].add(edge_weight.astype(jnp.float32))
    A = A + jnp.eye(num_nodes, dtype=jnp.float32)
    deg = A.sum(axis=1)
    dinv = jnp.where(deg > 0.0, jax.lax.rsqrt(deg), 0.0)
    return dinv[:, None] * A * dinv[None, :]


def dagnn_reference(x, a_hat, weight, bias, *, K):
    """Plain-JAX f32 reference mirroring the PyTorch forward."""
    xs = [x]
    h = x
    for _ in range(K):
        h = a_hat @ h
        xs.append(h)
    H = jnp.stack(xs, axis=1)                                      # [N, K+1, F]
    S = jax.nn.sigmoid(H @ weight.reshape(-1, 1) + bias[0, 0])     # [N, K+1, 1]
    return jnp.squeeze(jnp.transpose(S, (0, 2, 1)) @ H)            # [N, F]


if __name__ == "__main__":
    # Small but tiling-exercising problem: N=640 with tile=256 -> 3x3 tile grid + padding.
    N, F, K = 640, 32, 3
    key = jax.random.PRNGKey(0)
    kx, ke, kw, kb = jax.random.split(key, 4)

    x = jax.random.normal(kx, (N, F), dtype=jnp.float32)

    E = 4096
    edge_index = jax.random.randint(ke, (2, E), 0, N, dtype=jnp.int32)
    edge_weight = jnp.ones((E,), jnp.float32)
    a_hat = build_gcn_adjacency(edge_index, edge_weight, N)

    # Linear(F, 1, bias=True) with glorot-uniform weight; small bias to exercise it.
    limit = (6.0 / (F + 1)) ** 0.5
    weight = jax.random.uniform(kw, (1, F), jnp.float32, -limit, limit)
    bias = 0.1 * jax.random.normal(kb, (1, 1), dtype=jnp.float32)

    ref = dagnn_reference(x, a_hat, weight, bias, K=K)
    scale = float(jnp.max(jnp.abs(ref))) + 1e-6

    # f32 propagation, A_hat VMEM-resident (logic check).
    out_f32 = jax.block_until_ready(
        dagnn_conv_pallas(x, a_hat, weight, bias, K=K, tile=256,
                          compute_dtype=jnp.float32))
    assert out_f32.shape == (N, F)
    err_f32 = float(jnp.max(jnp.abs(out_f32 - ref))) / scale
    assert err_f32 < 2e-2, f"f32 path error too large: {err_f32}"

    # bf16 propagation, A_hat VMEM-resident (the default perf configuration).
    out_bf16 = jax.block_until_ready(
        dagnn_conv_pallas(x, a_hat, weight, bias, K=K, tile=256,
                          compute_dtype=jnp.bfloat16))
    assert out_bf16.shape == (N, F)
    err_bf16 = float(jnp.max(jnp.abs(out_bf16 - ref))) / scale
    assert err_bf16 < 5e-2, f"bf16 path error too large: {err_bf16}"

    # bf16 propagation with A_hat streamed from HBM (large-graph fallback path).
    out_stream = jax.block_until_ready(
        dagnn_conv_pallas(x, a_hat, weight, bias, K=K, tile=256,
                          compute_dtype=jnp.bfloat16, a_in_vmem=False))
    assert out_stream.shape == (N, F)
    err_stream = float(jnp.max(jnp.abs(out_stream - ref))) / scale
    assert err_stream < 5e-2, f"streamed path error too large: {err_stream}"

    print("KERNEL_OK")
</pallas_src>

<mosaic_0001>
module attributes {stable_mosaic.version = 11 : i64} {
  func.func @_dagnn_kernel(%arg0: i32, %arg1: i32, %arg2: i32, %arg3: memref<2304x256xf32, #tpu.memory_space<vmem>>, %arg4: memref<768x128xf32, #tpu.memory_space<vmem>>, %arg5: memref<1x1xf32, #tpu.memory_space<smem>>, %arg6: memref<768x128xf32, #tpu.memory_space<vmem>>, %arg7: memref<1536x128xf32, #tpu.memory_space<vmem>>, %arg8: memref<256x128xf32, #tpu.memory_space<vmem>>) attributes {dimension_semantics = [#tpu.dimension_semantics<arbitrary>, #tpu.dimension_semantics<arbitrary>, #tpu.dimension_semantics<arbitrary>], iteration_bounds = array<i64: 3, 3, 3>, scalar_prefetch = 0 : i64, scratch_operands = 2 : i64, tpu.core_type = #tpu.core_type<tc>, window_params = [{pipeline_mode = #tpu.pipeline_mode<synchronous>, transform_indices = @transform_0, window_bounds = array<i64: 2304, 256>}, {pipeline_mode = #tpu.pipeline_mode<synchronous>, transform_indices = @transform_1, window_bounds = array<i64: 768, 128>}, {transform_indices = @transform_2, window_bounds = array<i64: 1, 1>}, {pipeline_mode = #tpu.pipeline_mode<synchronous>, transform_indices = @transform_3, window_bounds = array<i64: 768, 128>}]} {
    %c0_i32 = arith.constant 0 : i32
    %0 = arith.cmpi eq, %arg0, %c0_i32 : i32
    %c0_i32_0 = arith.constant 0 : i32
    %1 = arith.cmpi eq, %arg1, %c0_i32_0 : i32
    %2 = arith.andi %0, %1 : i1
    %c0_i32_1 = arith.constant 0 : i32
    %3 = arith.cmpi eq, %arg2, %c0_i32_1 : i32
    %4 = arith.andi %2, %3 : i1
    %5 = arith.extui %4 : i1 to i32
    %c0_i32_2 = arith.constant 0 : i32
    %6 = arith.cmpi ne, %5, %c0_i32_2 : i32
    scf.if %6 {
      %c0_12 = arith.constant 0 : index
      %c0_13 = arith.constant 0 : index
      %31 = vector.load %arg4[%c0_12, %c0_13] : memref<768x128xf32, #tpu.memory_space<vmem>>, vector<768x128xf32>
      %c768 = arith.constant 768 : index
      %c0_14 = arith.constant 0 : index
      %32 = vector.load %arg7[%c768, %c0_14] : memref<1536x128xf32, #tpu.memory_space<vmem>>, vector<768x128xf32>
      tpu.vector_store %arg7[%c768, %c0_14], %31 {strides = array<i32>} : memref<1536x128xf32, #tpu.memory_space<vmem>>, vector<768x128xf32>,
    } else {
    }
    %c768_i32 = arith.constant 768 : i32
    %7 = arith.muli %arg2, %c768_i32 : i32
    %c256_i32 = arith.constant 256 : i32
    %8 = arith.muli %arg1, %c256_i32 : i32
    %9 = arith.addi %7, %8 : i32
    %10 = tpu.assume_multiple %9, 256 : i32
    %11 = arith.index_cast %10 : i32 to index
    %c0 = arith.constant 0 : index
    %12 = vector.load %arg3[%11, %c0] : memref<2304x256xf32, #tpu.memory_space<vmem>>, vector<256x256xf32>
    %c1_i32 = arith.constant 1 : i32
    %13 = arith.addi %arg0, %c1_i32 : i32
    %c2_i32 = arith.constant 2 : i32
    %14 = arith.remsi %13, %c2_i32 : i32
    %c768_i32_3 = arith.constant 768 : i32
    %15 = arith.muli %14, %c768_i32_3 : i32
    %c256_i32_4 = arith.constant 256 : i32
    %16 = arith.muli %arg2, %c256_i32_4 : i32
    %17 = arith.addi %15, %16 : i32
    %18 = tpu.assume_multiple %17, 256 : i32
    %19 = arith.index_cast %18 : i32 to index
    %c0_5 = arith.constant 0 : index
    %20 = vector.load %arg7[%19, %c0_5] : memref<1536x128xf32, #tpu.memory_space<vmem>>, vector<256x128xf32>
    %cst = arith.constant dense<0.000000e+00> : vector<256x128xf32>
    %21 = tpu.matmul %12, %20, %cst {dimension_numbers = #tpu.dot_dimension_numbers<[1], [0], [0], [1], [0, 0, 1, 1], [], []>} : vector<256x256xf32>, vector<256x128xf32>, vector<256x128xf32> -> vector<256x128xf32>
    %c0_i32_6 = arith.constant 0 : i32
    %22 = arith.cmpi eq, %arg2, %c0_i32_6 : i32
    %23 = arith.extui %22 : i1 to i32
    %c0_i32_7 = arith.constant 0 : i32
    %24 = arith.cmpi ne, %23, %c0_i32_7 : i32
    scf.if %24 {
      %c0_12 = arith.constant 0 : index
      %c0_13 = arith.constant 0 : index
      %31 = vector.load %arg8[%c0_12, %c0_13] : memref<256x128xf32, #tpu.memory_space<vmem>>, vector<256x128xf32>
      tpu.vector_store %arg8[%c0_12, %c0_13], %21 {strides = array<i32>} : memref<256x128xf32, #tpu.memory_space<vmem>>, vector<256x128xf32>,
    } else {
    }
    %c0_i32_8 = arith.constant 0 : i32
    %25 = arith.cmpi sgt, %arg2, %c0_i32_8 : i32
    %26 = arith.extui %25 : i1 to i32
    %c0_i32_9 = arith.constant 0 : i32
    %27 = arith.cmpi ne, %26, %c0_i32_9 : i32
    scf.if %27 {
      %c0_12 = arith.constant 0 : index
      %c0_13 = arith.constant 0 : index
      %31 = vector.load %arg8[%c0_12, %c0_13] : memref<256x128xf32, #tpu.memory_space<vmem>>, vector<256x128xf32>
      %32 = arith.addf %31, %21 : vector<256x128xf32>
      %c0_14 = arith.constant 0 : index
      %c0_15 = arith.constant 0 : index
      %33 = vector.load %arg8[%c0_14, %c0_15] : memref<256x128xf32, #tpu.memory_space<vmem>>, vector<256x128xf32>
      tpu.vector_store %arg8[%c0_14, %c0_15], %32 {strides = array<i32>} : memref<256x128xf32, #tpu.memory_space<vmem>>, vector<256x128xf32>,
    } else {
    }
    %c2_i32_10 = arith.constant 2 : i32
    %28 = arith.cmpi eq, %arg2, %c2_i32_10 : i32
    %29 = arith.extui %28 : i1 to i32
    %c0_i32_11 = arith.constant 0 : i32
    %30 = arith.cmpi ne, %29, %c0_i32_11 : i32
    scf.if %30 {
      %c0_12 = arith.constant 0 : index
      %c0_13 = arith.constant 0 : index
      %31 = memref.load %arg5[%c0_12, %c0_13] : memref<1x1xf32, #tpu.memory_space<smem>>
      %c0_14 = arith.constant 0 : index
      %c0_15 = arith.constant 0 : index
      %32 = vector.load %arg8[%c0_14, %c0_15] : memref<256x128xf32, #tpu.memory_space<vmem>>, vector<256x128xf32>
      %c256_i32_16 = arith.constant 256 : i32
      %33 = arith.muli %arg1, %c256_i32_16 : i32
      %34 = tpu.assume_multiple %33, 256 : i32
      %c2_i32_17 = arith.constant 2 : i32
      %35 = arith.remsi %arg0, %c2_i32_17 : i32
      %c768_i32_18 = arith.constant 768 : i32
      %36 = arith.muli %35, %c768_i32_18 : i32
      %c256_i32_19 = arith.constant 256 : i32
      %37 = arith.muli %arg1, %c256_i32_19 : i32
      %38 = arith.addi %36, %37 : i32
      %39 = tpu.assume_multiple %38, 256 : i32
      %40 = arith.index_cast %39 : i32 to index
      %c0_20 = arith.constant 0 : index
      %41 = vector.load %arg7[%40, %c0_20] : memref<1536x128xf32, #tpu.memory_space<vmem>>, vector<256x128xf32>
      tpu.vector_store %arg7[%40, %c0_20], %32 {strides = array<i32>} : memref<1536x128xf32, #tpu.memory_space<vmem>>, vector<256x128xf32>,
      %42 = vector.extract_strided_slice %32 {offsets = [0, 32], sizes = [256, 1], strides = [1, 1]} : vector<256x128xf32> to vector<256x1xf32>
      %43 = vector.broadcast %31 : f32 to vector<256x1xf32>
      %44 = arith.addf %42, %43 : vector<256x1xf32>
      %45 = arith.negf %44 : vector<256x1xf32>
      %46 = math.exp %45 : vector<256x1xf32>
      %cst_21 = arith.constant 1.000000e+00 : f32
      %47 = vector.broadcast %cst_21 : f32 to vector<256x1xf32>
      %48 = arith.addf %47, %46 : vector<256x1xf32>
      %49 = arith.divf %47, %48 : vector<256x1xf32>
      %50 = vector.broadcast %49 : vector<256x1xf32> to vector<256x128xf32>
      %51 = arith.mulf %50, %32 : vector<256x128xf32>
      %c0_i32_22 = arith.constant 0 : i32
      %52 = arith.cmpi eq, %arg0, %c0_i32_22 : i32
      %53 = arith.extui %52 : i1 to i32
      %c0_i32_23 = arith.constant 0 : i32
      %54 = arith.cmpi ne, %53, %c0_i32_23 : i32
      scf.if %54 {
        %58 = arith.index_cast %34 : i32 to index
        %c0_26 = arith.constant 0 : index
        %59 = vector.load %arg4[%58, %c0_26] : memref<768x128xf32, #tpu.memory_space<vmem>>, vector<256x128xf32>
        %60 = vector.extract_strided_slice %59 {offsets = [0, 32], sizes = [256, 1], strides = [1, 1]} : vector<256x128xf32> to vector<256x1xf32>
        %61 = vector.broadcast %31 : f32 to vector<256x1xf32>
        %62 = arith.addf %60, %61 : vector<256x1xf32>
        %63 = arith.negf %62 : vector<256x1xf32>
        %64 = math.exp %63 : vector<256x1xf32>
        %cst_27 = arith.constant 1.000000e+00 : f32
        %65 = vector.broadcast %cst_27 : f32 to vector<256x1xf32>
        %66 = arith.addf %65, %64 : vector<256x1xf32>
        %67 = arith.divf %65, %66 : vector<256x1xf32>
        %68 = vector.broadcast %67 : vector<256x1xf32> to vector<256x128xf32>
        %69 = arith.mulf %68, %59 : vector<256x128xf32>
        %70 = arith.addf %69, %51 : vector<256x128xf32>
        %71 = arith.index_cast %34 : i32 to index
        %c0_28 = arith.constant 0 : index
        %72 = vector.load %arg6[%71, %c0_28] : memref<768x128xf32, #tpu.memory_space<vmem>>, vector<256x128xf32>
        tpu.vector_store %arg6[%71, %c0_28], %70 {strides = array<i32>} : memref<768x128xf32, #tpu.memory_space<vmem>>, vector<256x128xf32>,
      } else {
      }
      %c0_i32_24 = arith.constant 0 : i32
      %55 = arith.cmpi sgt, %arg0, %c0_i32_24 : i32
      %56 = arith.extui %55 : i1 to i32
      %c0_i32_25 = arith.constant 0 : i32
      %57 = arith.cmpi ne, %56, %c0_i32_25 : i32
      scf.if %57 {
        %58 = arith.index_cast %34 : i32 to index
        %c0_26 = arith.constant 0 : index
        %59 = vector.load %arg6[%58, %c0_26] : memref<768x128xf32, #tpu.memory_space<vmem>>, vector<256x128xf32>
        %60 = arith.addf %59, %51 : vector<256x128xf32>
        %61 = arith.index_cast %34 : i32 to index
        %c0_27 = arith.constant 0 : index
        %62 = vector.load %arg6[%61, %c0_27] : memref<768x128xf32, #tpu.memory_space<vmem>>, vector<256x128xf32>
        tpu.vector_store %arg6[%61, %c0_27], %60 {strides = array<i32>} : memref<768x128xf32, #tpu.memory_space<vmem>>, vector<256x128xf32>,
      } else {
      }
    } else {
    }
    return
  }
  func.func @transform_0(%arg0: i32, %arg1: i32, %arg2: i32) -> (i32, i32) {
    %c0_i32 = arith.constant 0 : i32
    %c0_i32_0 = arith.constant 0 : i32
    %c0_i32_1 = arith.constant 0 : i32
    return %c0_i32, %c0_i32_0 : i32, i32
  }
  func.func @transform_1(%arg0: i32, %arg1: i32, %arg2: i32) -> (i32, i32) {
    %c0_i32 = arith.constant 0 : i32
    %c0_i32_0 = arith.constant 0 : i32
    %c0_i32_1 = arith.constant 0 : i32
    return %c0_i32, %c0_i32_0 : i32, i32
  }
  func.func @transform_2(%arg0: i32, %arg1: i32, %arg2: i32) -> (i32, i32) {
    %c0_i32 = arith.constant 0 : i32
    %c0_i32_0 = arith.constant 0 : i32
    %c0_i32_1 = arith.constant 0 : i32
    return %c0_i32, %c0_i32_0 : i32, i32
  }
  func.func @transform_3(%arg0: i32, %arg1: i32, %arg2: i32) -> (i32, i32) {
    %c0_i32 = arith.constant 0 : i32
    %c0_i32_0 = arith.constant 0 : i32
    %c0_i32_1 = arith.constant 0 : i32
    return %c0_i32, %c0_i32_0 : i32, i32
  }
}

</mosaic_0001>

<bundles_post_ra>
// kernel: tpu_custom_call.1
= control target key start
LH: loop header
LB: loop body
LE: loop exit
PB: predicated region body
PF: predicated region fallthrough
CT: control target
= control target key end

     0   :  { %s3876_s0 = inlined_call_operand.hbm [shape: f32[2304,256], index: 0, kind: input, shape index: {}]   ;;  %s3877_s1 = inlined_call_operand.hbm [shape: f32[768,128], index: 1, kind: input, shape index: {}]   ;;  %s3878_s2 = inlined_call_operand.<no memory space> [shape: f32[1,1], index: 2, kind: input, shape index: {}]   ;;  %s3879_s3 = inlined_call_operand.hbm [shape: f32[768,128], index: 3, kind: output, shape index: {}]  }
   0x1   :  { %8 = sst [smem:[#allocation4]] %s3878_s2 }
   0x2   :  { %9 = vsyncpa [#allocation6], 0 }
   0x3   :  { %10 = vsyncpa [#allocation9], 0 }
   0x4   :  { %11 = vsyncpa [#allocation7], 0  ;;  %s2773_s14 = smov 0   ;;  %s2775_s15 = smov 0  }
   0x5   :  { %s2777_s16 = smov 0   ;;  %s2779_s17 = smov 0  }
   0x6   :  { %s2781_s18 = smov 0   ;;  %s2783_s19 = smov 0  }
   0x7   :  { %s2785_s20 = smov 0  }
   0x8 LB: > { %s2068_s2 = sadd.s32 4294967295, %s2736_s20   ;;  %s29_s21 = sadd.s32 1, %s2724_s17  ;;  %s2736_s20 = sphi %s2785_s20, %s17_s20   ;;  %s2732_s19 = sphi %s2783_s19, %s3957_s19   ;;  %s2728_s18 = sphi %s2781_s18, %s3956_s18   ;;  %s2724_s17 = sphi %s2779_s17, %s3955_s17   ;;  %s2720_s16 = sphi %s2777_s16, %s3954_s16   ;;  %s2716_s15 = sphi %s2775_s15, %s3953_s15   ;;  %s2712_s14 = sphi %s2773_s14, %s3952_s14  }
   0x9   : > { %p30_p0 = scmp.ge.s32.totalorder %s29_s21, 3  ;;  %s32_s22 = sadd.s32 1, %s2728_s18 }
   0xa   : > { %s36_s23 = sadd.s32 1, %s2732_s19  ;;  %p2069_p1 = scmp.ge.s32.totalorder %s2736_s20, 1 }
   0xb   : > { %s3959_s21 = smov (%p30_p0, %s29_s21), 0  ;;  %s3961_s22 = smov (!%p30_p0, %s32_s22), %s2728_s18 }
   0xc   : > { %p125_p2 = scmp.lt.s32.totalorder %s2736_s20, 28  ;;  %p34_p3 = scmp.ge.s32.totalorder %s3961_s22, 3 }
   0xd   : > { %p2819_p4 = scmp.eq.s32.totalorder %s2068_s2, 0  ;;  %s2738_s26 = smov [#allocation5]  }
   0xe   : > { %p2823_p5 = pnand %p2069_p1, %p125_p2  ;;  %s3963_s22 = smov (%p34_p3, %s3961_s22), 0 }
   0xf   : > { %s3892_s24 = scalar_select %p2819_p4, 1, 0 }
  0x10   : > { %s3893_s25 = scalar_select %p2823_p5, 1, 0 }
  0x11   : > { %s3965_s23 = smov (!%p34_p3, %s36_s23), %s2732_s19  ;;  %p2247_p6 = pneg %p2823_p5 }
  0x12   : > { %s137_s27 = sshll.u32 %s2738_s26, 4  ;;  %p38_p7 = scmp.ge.s32.totalorder %s3965_s23, 3  ;;  %s138_s27 = int_to_ptr.vmem [resolvable:$true] %s137_s27 }
  0x13   : > { %p2834_p8 = pnand %p2819_p4, %p2247_p6  ;;  %s2588_s4 = scalar_lea.hbm %s3876_s0, 73728 }
  0x14   : > { %s3967_s23 = smov (%p38_p7, %s3965_s23), 0  ;;  %p2589_p9 = scmp.ne.s32.totalorder %s3876_s0, %s2588_s4 }
  0x15   : > { %p2590_p10 = pneg %p2834_p8  ;;  %p2595_p13 = scmp.lt.u32.totalorder %s2588_s4, %s3876_s0 }
  0x17   : > { %p2591_p11 = pnand %p2590_p10, %p2589_p9 }
  0x19   : > { %p2592_p12 = pneg %p2591_p11 }
  0x1b   : > { %p2597_p0 = pnand %p2595_p13, %p2592_p12 }
  0x1d   : > { %2600 = shalt.err (!%p2597_p0)
}
  0x1e   : > { %s2601_s9 = scalar_lea.vmem %s138_s27, 73728  ;;  %p2609_p6 = scmp.lt.s32.totalorder %s138_s27, %s138_s27 }
  0x1f   : > { %p2602_p1 = scmp.ne.s32.totalorder %s138_s27, %s2601_s9  ;;  %p2610_p7 = scmp.lt.s32.totalorder %s2601_s9, %s2601_s9 }
  0x21   : > { %p2604_p2 = pnand %p2602_p1, %p2590_p10  ;;  %p2611_p4 = por %p2610_p7, %p2609_p6 }
  0x23   : > { %p2605_p3 = pneg %p2604_p2 }
  0x25   : > { %p2612_p5 = pnand %p2611_p4, %p2605_p3 }
  0x27   : > { %2615 = shalt.err (!%p2612_p5)
}
  0x28   : > { %s2739_s10 = smov 256   ;;  %s2740_s11 = smov 16  }
  0x29   : > { %2250 = dma.hbm_to_vmem [thread:$0]  (!%p2834_p8), %s3876_s0, 73728, %s138_s27, [#allocation6], %s2739_s10, %s2739_s10, %s2740_s11  }
  0x2a   : > { %s2741_s26 = smov [#allocation8]   ;;  %s2616_s5 = scalar_lea.hbm %s3877_s1, 12288 }
  0x2b   : > { %s150_s29 = sshll.u32 %s2741_s26, 4  ;;  %p2617_p4 = scmp.ne.s32.totalorder %s3877_s1, %s2616_s5  ;;  %s151_s29 = int_to_ptr.vmem [resolvable:$true] %s150_s29 }
  0x2c   : > { %p2623_p11 = scmp.lt.u32.totalorder %s2616_s5, %s3877_s1 }
  0x2d   : > { %p2619_p5 = pnand %p2617_p4, %p2590_p10 }
  0x2f   : > { %p2620_p9 = pneg %p2619_p5 }
  0x31   : > { %p2625_p12 = pnand %p2623_p11, %p2620_p9 }
  0x33   : > { %2628 = shalt.err (!%p2625_p12)
}
  0x34   : > { %s2629_s27 = scalar_lea.vmem %s151_s29, 12288  ;;  %p2637_p2 = scmp.lt.s32.totalorder %s151_s29, %s151_s29 }
  0x35   : > { %p2630_p13 = scmp.ne.s32.totalorder %s151_s29, %s2629_s27  ;;  %p2638_p3 = scmp.lt.s32.totalorder %s2629_s27, %s2629_s27 }
  0x37   : > { %p2632_p0 = pnand %p2630_p13, %p2590_p10  ;;  %p2639_p6 = por %p2638_p3, %p2637_p2 }
  0x39   : > { %p2633_p1 = pneg %p2632_p0 }
  0x3b   : > { %p2640_p7 = pnand %p2639_p6, %p2633_p1 }
  0x3d   : > { %2643 = shalt.err (!%p2640_p7)
}
  0x3e   : > { %s2742_s10 = smov 128   ;;  %s2743_s11 = smov 8  }
  0x3f   : > { %2253 = dma.hbm_to_vmem [thread:$0]  (!%p2834_p8), %s3877_s1, 12288, %s151_s29, [#allocation9], %s2742_s10, %s2742_s10, %s2743_s11  }
  0x40   : > { %p3895_p4 = scmp.ne.s32.totalorder %s3893_s25, 0 }
  0x41   : > { %p3896_p5 = scmp.ne.s32.totalorder (!%p3895_p4), %s3892_s24, 0 }
  0x42   : > { %169 = sbr.rel (%p3895_p4) target bundleno = 1015 (0x3f7), region = 32 }
  0x49   : > { %2699 = dma.done.wait (%p3896_p5), [#allocation6], 73728  }
  0x4a   : > { %2701 = vsyncadd (%p3896_p5), [#allocation6], 4294893568 }
  0x4b   : > { %2703 = dma.done.wait (%p3896_p5), [#allocation9], 12288  }
  0x4c   : > { %2705 = vsyncadd (%p3896_p5), [#allocation9], 4294955008  ;;  %p187_p10 = scmp.eq.s32.totalorder %s2720_s16, 0  ;;  %p188_p8 = scmp.eq.s32.totalorder %s2716_s15, 0 }
  0x4d   : > { %p191_p11 = scmp.eq.s32.totalorder %s2712_s14, 0 }
  0x4e   : > { %p189_p9 = pnand %p188_p8, %p187_p10 }
  0x50   : > { %p190_p12 = pneg %p189_p9 }
  0x52   : > { %p192_p13 = pnand %p191_p11, %p190_p12 }
  0x53   : > { %v196_v0 = vld [vmem:[#allocation8] sm:$0xff] (!%p192_p13)  ;;  %v197_v1 = vld [vmem:[#allocation8 + $0x8] sm:$0xff] (!%p192_p13)  ;;  %v198_v2 = vld [vmem:[#allocation8 + $0x10] sm:$0xff] (!%p192_p13) }
  0x54   : > { %195 = sbr.rel (%p192_p13) target bundleno = 132 (0x84), region = 44  ;;  %292 = vst [vmem:[#allocation2 + $0x300] sm:$0xff] (!%p192_p13), %v196_v0  ;;  %293 = vst [vmem:[#allocation2 + $0x308] sm:$0xff] (!%p192_p13), %v197_v1  ;;  %v199_v3 = vld [vmem:[#allocation8 + $0x18] sm:$0xff] (!%p192_p13)  ;;  %v200_v4 = vld [vmem:[#allocation8 + $0x20] sm:$0xff] (!%p192_p13) }
  0x55   : > { %294 = vst [vmem:[#allocation2 + $0x310] sm:$0xff] (!%p192_p13), %v198_v2  ;;  %v201_v5 = vld [vmem:[#allocation8 + $0x28] sm:$0xff] (!%p192_p13)  ;;  %295 = vst [vmem:[#allocation2 + $0x318] sm:$0xff] (!%p192_p13), %v199_v3  ;;  %v202_v6 = vld [vmem:[#allocation8 + $0x30] sm:$0xff] (!%p192_p13) }
  0x56   : > { %296 = vst [vmem:[#allocation2 + $0x320] sm:$0xff] (!%p192_p13), %v200_v4  ;;  %297 = vst [vmem:[#allocation2 + $0x328] sm:$0xff] (!%p192_p13), %v201_v5  ;;  %v203_v7 = vld [vmem:[#allocation8 + $0x38] sm:$0xff] (!%p192_p13)  ;;  %v204_v8 = vld [vmem:[#allocation8 + $0x40] sm:$0xff] (!%p192_p13) }
  0x57   : > { %298 = vst [vmem:[#allocation2 + $0x330] sm:$0xff] (!%p192_p13), %v202_v6  ;;  %299 = vst [vmem:[#allocation2 + $0x338] sm:$0xff] (!%p192_p13), %v203_v7  ;;  %v205_v9 = vld [vmem:[#allocation8 + $0x48] sm:$0xff] (!%p192_p13)  ;;  %v206_v10 = vld [vmem:[#allocation8 + $0x50] sm:$0xff] (!%p192_p13) }
  0x58   : > { %300 = vst [vmem:[#allocation2 + $0x340] sm:$0xff] (!%p192_p13), %v204_v8  ;;  %v207_v11 = vld [vmem:[#allocation8 + $0x58] sm:$0xff] (!%p192_p13)  ;;  %301 = vst [vmem:[#allocation2 + $0x348] sm:$0xff] (!%p192_p13), %v205_v9  ;;  %v208_v12 = vld [vmem:[#allocation8 + $0x60] sm:$0xff] (!%p192_p13) }
  0x59   : > { %302 = vst [vmem:[#allocation2 + $0x350] sm:$0xff] (!%p192_p13), %v206_v10  ;;  %303 = vst [vmem:[#allocation2 + $0x358] sm:$0xff] (!%p192_p13), %v207_v11  ;;  %v209_v13 = vld [vmem:[#allocation8 + $0x68] sm:$0xff] (!%p192_p13)  ;;  %v210_v14 = vld [vmem:[#allocation8 + $0x70] sm:$0xff] (!%p192_p13) }
  0x5a   : > { %304 = vst [vmem:[#allocation2 + $0x360] sm:$0xff] (!%p192_p13), %v208_v12  ;;  %305 = vst [vmem:[#allocation2 + $0x368] sm:$0xff] (!%p192_p13), %v209_v13  ;;  %v211_v15 = vld [vmem:[#allocation8 + $0x78] sm:$0xff] (!%p192_p13)  ;;  %v212_v16 = vld [vmem:[#allocation8 + $0x80] sm:$0xff] (!%p192_p13) }
  0x5b   : > { %306 = vst [vmem:[#allocation2 + $0x370] sm:$0xff] %v210_v14  ;;  %v213_v17 = vld [vmem:[#allocation8 + $0x88] sm:$0xff]  ;;  %307 = vst [vmem:[#allocation2 + $0x378] sm:$0xff] %v211_v15  ;;  %v214_v18 = vld [vmem:[#allocation8 + $0x90] sm:$0xff] }
  0x5c   : > { %308 = vst [vmem:[#allocation2 + $0x380] sm:$0xff] %v212_v16  ;;  %309 = vst [vmem:[#allocation2 + $0x388] sm:$0xff] %v213_v17  ;;  %v215_v19 = vld [vmem:[#allocation8 + $0x98] sm:$0xff]  ;;  %v216_v20 = vld [vmem:[#allocation8 + $0xa0] sm:$0xff] }
  0x5d   : > { %310 = vst [vmem:[#allocation2 + $0x390] sm:$0xff] %v214_v18  ;;  %311 = vst [vmem:[#allocation2 + $0x398] sm:$0xff] %v215_v19  ;;  %v217_v21 = vld [vmem:[#allocation8 + $0xa8] sm:$0xff]  ;;  %v218_v22 = vld [vmem:[#allocation8 + $0xb0] sm:$0xff] }
  0x5e   : > { %312 = vst [vmem:[#allocation2 + $0x3a0] sm:$0xff] %v216_v20  ;;  %v219_v23 = vld [vmem:[#allocation8 + $0xb8] sm:$0xff]  ;;  %313 = vst [vmem:[#allocation2 + $0x3a8] sm:$0xff] %v217_v21  ;;  %v220_v24 = vld [vmem:[#allocation8 + $0xc0] sm:$0xff] }
  0x5f   : > { %314 = vst [vmem:[#allocation2 + $0x3b0] sm:$0xff] %v218_v22  ;;  %315 = vst [vmem:[#allocation2 + $0x3b8] sm:$0xff] %v219_v23  ;;  %v221_v25 = vld [vmem:[#allocation8 + $0xc8] sm:$0xff]  ;;  %v222_v26 = vld [vmem:[#allocation8 + $0xd0] sm:$0xff] }
  0x60   : > { %316 = vst [vmem:[#allocation2 + $0x3c0] sm:$0xff] %v220_v24  ;;  %317 = vst [vmem:[#allocation2 + $0x3c8] sm:$0xff] %v221_v25  ;;  %v223_v27 = vld [vmem:[#allocation8 + $0xd8] sm:$0xff]  ;;  %v224_v28 = vld [vmem:[#allocation8 + $0xe0] sm:$0xff] }
  0x61   : > { %318 = vst [vmem:[#allocation2 + $0x3d0] sm:$0xff] %v222_v26  ;;  %v225_v29 = vld [vmem:[#allocation8 + $0xe8] sm:$0xff]  ;;  %319 = vst [vmem:[#allocation2 + $0x3d8] sm:$0xff] %v223_v27  ;;  %v226_v30 = vld [vmem:[#allocation8 + $0xf0] sm:$0xff] }
  0x62   : > { %320 = vst [vmem:[#allocation2 + $0x3e0] sm:$0xff] %v224_v28  ;;  %321 = vst [vmem:[#allocation2 + $0x3e8] sm:$0xff] %v225_v29  ;;  %v227_v31 = vld [vmem:[#allocation8 + $0xf8] sm:$0xff]  ;;  %v228_v32 = vld [vmem:[#allocation8 + $0x100] sm:$0xff] }
  0x63   : > { %322 = vst [vmem:[#allocation2 + $0x3f0] sm:$0xff] %v226_v30  ;;  %323 = vst [vmem:[#allocation2 + $0x3f8] sm:$0xff] %v227_v31  ;;  %v229_v33 = vld [vmem:[#allocation8 + $0x108] sm:$0xff]  ;;  %v230_v34 = vld [vmem:[#allocation8 + $0x110] sm:$0xff] }
  0x64   : > { %324 = vst [vmem:[#allocation2 + $0x400] sm:$0xff] %v228_v32  ;;  %v231_v35 = vld [vmem:[#allocation8 + $0x118] sm:$0xff]  ;;  %325 = vst [vmem:[#allocation2 + $0x408] sm:$0xff] %v229_v33  ;;  %v232_v36 = vld [vmem:[#allocation8 + $0x120] sm:$0xff] }
  0x65   : > { %326 = vst [vmem:[#allocation2 + $0x410] sm:$0xff] %v230_v34  ;;  %327 = vst [vmem:[#allocation2 + $0x418] sm:$0xff] %v231_v35  ;;  %v233_v37 = vld [vmem:[#allocation8 + $0x128] sm:$0xff]  ;;  %v234_v38 = vld [vmem:[#allocation8 + $0x130] sm:$0xff] }
  0x66   : > { %328 = vst [vmem:[#allocation2 + $0x420] sm:$0xff] %v232_v36  ;;  %329 = vst [vmem:[#allocation2 + $0x428] sm:$0xff] %v233_v37  ;;  %v235_v39 = vld [vmem:[#allocation8 + $0x138] sm:$0xff]  ;;  %v236_v40 = vld [vmem:[#allocation8 + $0x140] sm:$0xff] }
  0x67   : > { %330 = vst [vmem:[#allocation2 + $0x430] sm:$0xff] %v234_v38  ;;  %v237_v41 = vld [vmem:[#allocation8 + $0x148] sm:$0xff]  ;;  %331 = vst [vmem:[#allocation2 + $0x438] sm:$0xff] %v235_v39  ;;  %v238_v42 = vld [vmem:[#allocation8 + $0x150] sm:$0xff] }
  0x68   : > { %332 = vst [vmem:[#allocation2 + $0x440] sm:$0xff] %v236_v40  ;;  %333 = vst [vmem:[#allocation2 + $0x448] sm:$0xff] %v237_v41  ;;  %v239_v43 = vld [vmem:[#allocation8 + $0x158] sm:$0xff]  ;;  %v240_v44 = vld [vmem:[#allocation8 + $0x160] sm:$0xff] }
  0x69   : > { %334 = vst [vmem:[#allocation2 + $0x450] sm:$0xff] %v238_v42  ;;  %335 = vst [vmem:[#allocation2 + $0x458] sm:$0xff] %v239_v43  ;;  %v241_v45 = vld [vmem:[#allocation8 + $0x168] sm:$0xff]  ;;  %v242_v46 = vld [vmem:[#allocation8 + $0x170] sm:$0xff] }
  0x6a   : > { %336 = vst [vmem:[#allocation2 + $0x460] sm:$0xff] %v240_v44  ;;  %v243_v47 = vld [vmem:[#allocation8 + $0x178] sm:$0xff]  ;;  %337 = vst [vmem:[#allocation2 + $0x468] sm:$0xff] %v241_v45  ;;  %v244_v48 = vld [vmem:[#allocation8 + $0x180] sm:$0xff] }
  0x6b   : > { %338 = vst [vmem:[#allocation2 + $0x470] sm:$0xff] %v242_v46  ;;  %339 = vst [vmem:[#allocation2 + $0x478] sm:$0xff] %v243_v47  ;;  %v245_v49 = vld [vmem:[#allocation8 + $0x188] sm:$0xff]  ;;  %v246_v50 = vld [vmem:[#allocation8 + $0x190] sm:$0xff] }
  0x6c   : > { %340 = vst [vmem:[#allocation2 + $0x480] sm:$0xff] %v244_v48  ;;  %341 = vst [vmem:[#allocation2 + $0x488] sm:$0xff] %v245_v49  ;;  %v247_v51 = vld [vmem:[#allocation8 + $0x198] sm:$0xff]  ;;  %v248_v52 = vld [vmem:[#allocation8 + $0x1a0] sm:$0xff] }
  0x6d   : > { %342 = vst [vmem:[#allocation2 + $0x490] sm:$0xff] %v246_v50  ;;  %v249_v53 = vld [vmem:[#allocation8 + $0x1a8] sm:$0xff]  ;;  %343 = vst [vmem:[#allocation2 + $0x498] sm:$0xff] %v247_v51  ;;  %v250_v54 = vld [vmem:[#allocation8 + $0x1b0] sm:$0xff] }
  0x6e   : > { %344 = vst [vmem:[#allocation2 + $0x4a0] sm:$0xff] %v248_v52  ;;  %345 = vst [vmem:[#allocation2 + $0x4a8] sm:$0xff] %v249_v53  ;;  %v251_v55 = vld [vmem:[#allocation8 + $0x1b8] sm:$0xff]  ;;  %v252_v56 = vld [vmem:[#allocation8 + $0x1c0] sm:$0xff] }
  0x6f   : > { %346 = vst [vmem:[#allocation2 + $0x4b0] sm:$0xff] %v250_v54  ;;  %347 = vst [vmem:[#allocation2 + $0x4b8] sm:$0xff] %v251_v55  ;;  %v253_v57 = vld [vmem:[#allocation8 + $0x1c8] sm:$0xff]  ;;  %v254_v58 = vld [vmem:[#allocation8 + $0x1d0] sm:$0xff] }
  0x70   : > { %348 = vst [vmem:[#allocation2 + $0x4c0] sm:$0xff] %v252_v56  ;;  %v255_v59 = vld [vmem:[#allocation8 + $0x1d8] sm:$0xff]  ;;  %349 = vst [vmem:[#allocation2 + $0x4c8] sm:$0xff] %v253_v57  ;;  %v256_v60 = vld [vmem:[#allocation8 + $0x1e0] sm:$0xff] }
  0x71   : > { %350 = vst [vmem:[#allocation2 + $0x4d0] sm:$0xff] %v254_v58  ;;  %351 = vst [vmem:[#allocation2 + $0x4d8] sm:$0xff] %v255_v59  ;;  %v257_v61 = vld [vmem:[#allocation8 + $0x1e8] sm:$0xff]  ;;  %v258_v62 = vld [vmem:[#allocation8 + $0x1f0] sm:$0xff] }
  0x72   : > { %352 = vst [vmem:[#allocation2 + $0x4e0] sm:$0xff] %v256_v60  ;;  %353 = vst [vmem:[#allocation2 + $0x4e8] sm:$0xff] %v257_v61  ;;  %v259_v63 = vld [vmem:[#allocation8 + $0x1f8] sm:$0xff]  ;;  %v260_v0 = vld [vmem:[#allocation8 + $0x200] sm:$0xff] }
  0x73   : > { %354 = vst [vmem:[#allocation2 + $0x4f0] sm:$0xff] %v258_v62  ;;  %v261_v1 = vld [vmem:[#allocation8 + $0x208] sm:$0xff]  ;;  %355 = vst [vmem:[#allocation2 + $0x4f8] sm:$0xff] %v259_v63  ;;  %v262_v2 = vld [vmem:[#allocation8 + $0x210] sm:$0xff] }
  0x74   : > { %356 = vst [vmem:[#allocation2 + $0x500] sm:$0xff] %v260_v0  ;;  %357 = vst [vmem:[#allocation2 + $0x508] sm:$0xff] %v261_v1  ;;  %v263_v3 = vld [vmem:[#allocation8 + $0x218] sm:$0xff]  ;;  %v264_v4 = vld [vmem:[#allocation8 + $0x220] sm:$0xff] }
  0x75   : > { %358 = vst [vmem:[#allocation2 + $0x510] sm:$0xff] %v262_v2  ;;  %359 = vst [vmem:[#allocation2 + $0x518] sm:$0xff] %v263_v3  ;;  %v265_v5 = vld [vmem:[#allocation8 + $0x228] sm:$0xff]  ;;  %v266_v6 = vld [vmem:[#allocation8 + $0x230] sm:$0xff] }
  0x76   : > { %360 = vst [vmem:[#allocation2 + $0x520] sm:$0xff] %v264_v4  ;;  %v267_v7 = vld [vmem:[#allocation8 + $0x238] sm:$0xff]  ;;  %361 = vst [vmem:[#allocation2 + $0x528] sm:$0xff] %v265_v5  ;;  %v268_v8 = vld [vmem:[#allocation8 + $0x240] sm:$0xff] }
  0x77   : > { %362 = vst [vmem:[#allocation2 + $0x530] sm:$0xff] %v266_v6  ;;  %363 = vst [vmem:[#allocation2 + $0x538] sm:$0xff] %v267_v7  ;;  %v269_v9 = vld [vmem:[#allocation8 + $0x248] sm:$0xff]  ;;  %v270_v10 = vld [vmem:[#allocation8 + $0x250] sm:$0xff] }
  0x78   : > { %364 = vst [vmem:[#allocation2 + $0x540] sm:$0xff] %v268_v8  ;;  %365 = vst [vmem:[#allocation2 + $0x548] sm:$0xff] %v269_v9  ;;  %v271_v11 = vld [vmem:[#allocation8 + $0x258] sm:$0xff]  ;;  %v272_v12 = vld [vmem:[#allocation8 + $0x260] sm:$0xff] }
  0x79   : > { %366 = vst [vmem:[#allocation2 + $0x550] sm:$0xff] %v270_v10  ;;  %v273_v13 = vld [vmem:[#allocation8 + $0x268] sm:$0xff]  ;;  %367 = vst [vmem:[#allocation2 + $0x558] sm:$0xff] %v271_v11  ;;  %v274_v14 = vld [vmem:[#allocation8 + $0x270] sm:$0xff] }
  0x7a   : > { %368 = vst [vmem:[#allocation2 + $0x560] sm:$0xff] %v272_v12  ;;  %369 = vst [vmem:[#allocation2 + $0x568] sm:$0xff] %v273_v13  ;;  %v275_v15 = vld [vmem:[#allocation8 + $0x278] sm:$0xff]  ;;  %v276_v16 = vld [vmem:[#allocation8 + $0x280] sm:$0xff] }
  0x7b   : > { %370 = vst [vmem:[#allocation2 + $0x570] sm:$0xff] %v274_v14  ;;  %371 = vst [vmem:[#allocation2 + $0x578] sm:$0xff] %v275_v15  ;;  %v277_v17 = vld [vmem:[#allocation8 + $0x288] sm:$0xff]  ;;  %v278_v18 = vld [vmem:[#allocation8 + $0x290] sm:$0xff] }
  0x7c   : > { %372 = vst [vmem:[#allocation2 + $0x580] sm:$0xff] %v276_v16  ;;  %v279_v19 = vld [vmem:[#allocation8 + $0x298] sm:$0xff]  ;;  %373 = vst [vmem:[#allocation2 + $0x588] sm:$0xff] %v277_v17  ;;  %v280_v20 = vld [vmem:[#allocation8 + $0x2a0] sm:$0xff] }
  0x7d   : > { %374 = vst [vmem:[#allocation2 + $0x590] sm:$0xff] %v278_v18  ;;  %375 = vst [vmem:[#allocation2 + $0x598] sm:$0xff] %v279_v19  ;;  %v281_v21 = vld [vmem:[#allocation8 + $0x2a8] sm:$0xff]  ;;  %v282_v22 = vld [vmem:[#allocation8 + $0x2b0] sm:$0xff] }
  0x7e   : > { %376 = vst [vmem:[#allocation2 + $0x5a0] sm:$0xff] %v280_v20  ;;  %377 = vst [vmem:[#allocation2 + $0x5a8] sm:$0xff] %v281_v21  ;;  %v283_v23 = vld [vmem:[#allocation8 + $0x2b8] sm:$0xff]  ;;  %v284_v24 = vld [vmem:[#allocation8 + $0x2c0] sm:$0xff] }
  0x7f   : > { %378 = vst [vmem:[#allocation2 + $0x5b0] sm:$0xff] %v282_v22  ;;  %v285_v25 = vld [vmem:[#allocation8 + $0x2c8] sm:$0xff]  ;;  %379 = vst [vmem:[#allocation2 + $0x5b8] sm:$0xff] %v283_v23  ;;  %v286_v26 = vld [vmem:[#allocation8 + $0x2d0] sm:$0xff] }
  0x80   : > { %380 = vst [vmem:[#allocation2 + $0x5c0] sm:$0xff] %v284_v24  ;;  %381 = vst [vmem:[#allocation2 + $0x5c8] sm:$0xff] %v285_v25  ;;  %v287_v27 = vld [vmem:[#allocation8 + $0x2d8] sm:$0xff]  ;;  %v288_v28 = vld [vmem:[#allocation8 + $0x2e0] sm:$0xff] }
  0x81   : > { %382 = vst [vmem:[#allocation2 + $0x5d0] sm:$0xff] %v286_v26  ;;  %383 = vst [vmem:[#allocation2 + $0x5d8] sm:$0xff] %v287_v27  ;;  %v289_v29 = vld [vmem:[#allocation8 + $0x2e8] sm:$0xff]  ;;  %v290_v30 = vld [vmem:[#allocation8 + $0x2f0] sm:$0xff] }
  0x82   : > { %384 = vst [vmem:[#allocation2 + $0x5e0] sm:$0xff] %v288_v28  ;;  %v291_v31 = vld [vmem:[#allocation8 + $0x2f8] sm:$0xff]  ;;  %385 = vst [vmem:[#allocation2 + $0x5e8] sm:$0xff] %v289_v29 }
  0x83   : > { %386 = vst [vmem:[#allocation2 + $0x5f0] sm:$0xff] %v290_v30  ;;  %387 = vst [vmem:[#allocation2 + $0x5f8] sm:$0xff] %v291_v31 }
  0x84 PF: > { %s460_s24 = sadd.s32 1, %s2720_s16  ;;  %v2744_v32 = vmov 0.0|0.0   ;;  %s388_s26 = smul.u32 768, %s2712_s14 }
  0x85   : > { %2155 = vmatprep.subr.bf16.mxu0 %v2744_v32  ;;  %2203 = vmatprep.subr.bf16.mxu1 %v2744_v32  ;;  %p461_p0 = scmp.lt.s32.totalorder %s460_s24, 0  ;;  %s462_s25 = ssub.s32 0, %s460_s24 }
  0x86   : > { %s2078_s28 = smin.u32 %s462_s25, %s460_s24  ;;  %s2900_s30 = sshll.u32 %s2716_s15, 8 }
  0x87   : > { %s464_s29 = sand.u32 1, %s2078_s28   ;;  %s390_s5 = sadd.s32 %s2900_s30, %s388_s26 }
  0x88   : > { %s465_s4 = ssub.s32 0, %s464_s29  ;;  %s2079_s6 = sshll.u32 %s2712_s14, 8 }
  0x89   : > { %s3969_s4 = smov (!%p461_p0, %s465_s4), %s464_s29  ;;  %s391_s7 = sshra.s32 %s390_s5, 3 }
  0x8a   : > { %s467_s8 = smul.u32 768, %s3969_s4  ;;  %s2154_s9 = sshll.u32 %s391_s7, 4 }
  0x8b   : > { %s2904_s10 = scalar_lea.vmem [#allocation5], %s2154_s9  ;;  %p2080_p1 = scmp.ne.s32.totalorder %s2712_s14, 0 }
  0x8c   : > { %s469_s27 = sadd.s32 %s2079_s6, %s467_s8  ;;  %v397_v33 = vld [vmem:[%s2904_s10 + $0x8] sm:$0xff]  ;;  %v396_v19 = vld [vmem:[%s2904_s10] sm:$0xff]  ;;  %v399_v21 = vld [vmem:[%s2904_s10 + $0x18] sm:$0xff] }
  0x8d   : > { %v429_v34 = vld [vmem:[%s2904_s10 + $0x108] sm:$0xff]  ;;  %567 = vmatprep.mubr.f32.mxu0 %v397_v33  ;;  %s2908_s11 = scalar_lea.vmem [#allocation2], %s469_s27  ;;  %v428_v20 = vld [vmem:[%s2904_s10 + $0x100] sm:$0xff]  ;;  %v431_v22 = vld [vmem:[%s2904_s10 + $0x118] sm:$0xff] }
  0x8e   : > { %647 = vmatprep.mubr.f32.mxu1 %v429_v34  ;;  %v471_v35 = vld [vmem:[%s2908_s11] sm:$0xff]  ;;  %v472_v36 = vld [vmem:[%s2908_s11 + $0x8] sm:$0xff]  ;;  %v473_v37 = vld [vmem:[%s2908_s11 + $0x10] sm:$0xff] }
  0x8f   : > { %v2156_v38 = vpack.c.bf16 %v472_v36, %v471_v35  ;;  %v474_v39 = vld [vmem:[%s2908_s11 + $0x18] sm:$0xff]  ;;  %v475_v41 = vld [vmem:[%s2908_s11 + $0x20] sm:$0xff]  ;;  %v476_v42 = vld [vmem:[%s2908_s11 + $0x28] sm:$0xff] }
  0x90   : > { %v2159_v40 = vpack.c.bf16 %v474_v39, %v473_v37  ;;  %v2162_v43 = vpack.c.bf16 %v476_v42, %v475_v41  ;;  %v477_v44 = vld [vmem:[%s2908_s11 + $0x30] sm:$0xff]  ;;  %v478_v45 = vld [vmem:[%s2908_s11 + $0x38] sm:$0xff]  ;;  %v479_v47 = vld [vmem:[%s2908_s11 + $0x40] sm:$0xff] }
  0x91   : > { %2157 = vmatpush1.bf16.msra.mxu0 %v2156_v38  ;;  %2219 = vmatpush1.bf16.msra.mxu1 %v2156_v38  ;;  %v2165_v46 = vpack.c.bf16 %v478_v45, %v477_v44  ;;  %v480_v48 = vld [vmem:[%s2908_s11 + $0x48] sm:$0xff]  ;;  %v481_v50 = vld [vmem:[%s2908_s11 + $0x50] sm:$0xff]  ;;  %v482_v51 = vld [vmem:[%s2908_s11 + $0x58] sm:$0xff] }
  0x92   : > { %2158 = vmatprep.subr.bf16.mxu0 %v2744_v32  ;;  %2204 = vmatprep.subr.bf16.mxu1 %v2744_v32  ;;  %v2168_v49 = vpack.c.bf16 %v480_v48, %v479_v47  ;;  %v2171_v52 = vpack.c.bf16 %v482_v51, %v481_v50  ;;  %v483_v53 = vld [vmem:[%s2908_s11 + $0x60] sm:$0xff]  ;;  %v484_v54 = vld [vmem:[%s2908_s11 + $0x68] sm:$0xff]  ;;  %v485_v56 = vld [vmem:[%s2908_s11 + $0x70] sm:$0xff] }
  0x93   : > { %v2174_v55 = vpack.c.bf16 %v484_v54, %v483_v53  ;;  %v486_v57 = vld [vmem:[%s2908_s11 + $0x78] sm:$0xff]  ;;  %v487_v59 = vld [vmem:[%s2908_s11 + $0x80] sm:$0xff]  ;;  %v488_v60 = vld [vmem:[%s2908_s11 + $0x88] sm:$0xff] }
  0x94   : > { %v2177_v58 = vpack.c.bf16 %v486_v57, %v485_v56  ;;  %v2180_v61 = vpack.c.bf16 %v488_v60, %v487_v59  ;;  %v489_v62 = vld [vmem:[%s2908_s11 + $0x90] sm:$0xff]  ;;  %v490_v63 = vld [vmem:[%s2908_s11 + $0x98] sm:$0xff]  ;;  %v491_v1 = vld [vmem:[%s2908_s11 + $0xa0] sm:$0xff] }
  0x95   : > { %2160 = vmatpush1.bf16.msra.mxu0 %v2159_v40  ;;  %2220 = vmatpush1.bf16.msra.mxu1 %v2159_v40  ;;  %v2183_v0 = vpack.c.bf16 %v490_v63, %v489_v62  ;;  %v492_v2 = vld [vmem:[%s2908_s11 + $0xa8] sm:$0xff]  ;;  %v493_v4 = vld [vmem:[%s2908_s11 + $0xb0] sm:$0xff]  ;;  %v494_v5 = vld [vmem:[%s2908_s11 + $0xb8] sm:$0xff] }
  0x96   : > { %2161 = vmatprep.subr.bf16.mxu0 %v2744_v32  ;;  %2205 = vmatprep.subr.bf16.mxu1 %v2744_v32  ;;  %v2186_v3 = vpack.c.bf16 %v492_v2, %v491_v1  ;;  %v2189_v6 = vpack.c.bf16 %v494_v5, %v493_v4  ;;  %v495_v7 = vld [vmem:[%s2908_s11 + $0xc0] sm:$0xff]  ;;  %v496_v8 = vld [vmem:[%s2908_s11 + $0xc8] sm:$0xff]  ;;  %v497_v10 = vld [vmem:[%s2908_s11 + $0xd0] sm:$0xff] }
  0x97   : > { %v2192_v9 = vpack.c.bf16 %v496_v8, %v495_v7  ;;  %v498_v11 = vld [vmem:[%s2908_s11 + $0xd8] sm:$0xff]  ;;  %v499_v13 = vld [vmem:[%s2908_s11 + $0xe0] sm:$0xff]  ;;  %v500_v14 = vld [vmem:[%s2908_s11 + $0xe8] sm:$0xff] }
  0x98   : > { %v2195_v12 = vpack.c.bf16 %v498_v11, %v497_v10  ;;  %v2198_v15 = vpack.c.bf16 %v500_v14, %v499_v13  ;;  %v501_v16 = vld [vmem:[%s2908_s11 + $0xf0] sm:$0xff]  ;;  %v502_v17 = vld [vmem:[%s2908_s11 + $0xf8] sm:$0xff]  ;;  %v401_v25 = vld [vmem:[%s2904_s10 + $0x28] sm:$0xff] }
  0x99   : > { %2163 = vmatpush1.bf16.msra.mxu0 %v2162_v43  ;;  %2221 = vmatpush1.bf16.msra.mxu1 %v2162_v43  ;;  %v2201_v18 = vpack.c.bf16 %v502_v17, %v501_v16  ;;  %v398_v23 = vld [vmem:[%s2904_s10 + $0x10] sm:$0xff]  ;;  %v433_v26 = vld [vmem:[%s2904_s10 + $0x128] sm:$0xff]  ;;  %v400_v27 = vld [vmem:[%s2904_s10 + $0x20] sm:$0xff] }
  0x9a   : > { %2164 = vmatprep.subr.bf16.mxu0 %v2744_v32  ;;  %2206 = vmatprep.subr.bf16.mxu1 %v2744_v32  ;;  %v430_v24 = vld [vmem:[%s2904_s10 + $0x110] sm:$0xff]  ;;  %v432_v28 = vld [vmem:[%s2904_s10 + $0x120] sm:$0xff]  ;;  %v403_v29 = vld [vmem:[%s2904_s10 + $0x38] sm:$0xff] }
  0x9b   : > { %v435_v30 = vld [vmem:[%s2904_s10 + $0x138] sm:$0xff]  ;;  %v402_v31 = vld [vmem:[%s2904_s10 + $0x30] sm:$0xff]  ;;  %v405_v33 = vld [vmem:[%s2904_s10 + $0x48] sm:$0xff] }
  0x9c   : > { %v437_v34 = vld [vmem:[%s2904_s10 + $0x148] sm:$0xff]  ;;  %v404_v35 = vld [vmem:[%s2904_s10 + $0x40] sm:$0xff]  ;;  %v407_v37 = vld [vmem:[%s2904_s10 + $0x58] sm:$0xff] }
  0x9d   : > { %2166 = vmatpush1.bf16.msra.mxu0 %v2165_v46  ;;  %2222 = vmatpush1.bf16.msra.mxu1 %v2165_v46  ;;  %v436_v36 = vld [vmem:[%s2904_s10 + $0x140] sm:$0xff]  ;;  %v439_v38 = vld [vmem:[%s2904_s10 + $0x158] sm:$0xff]  ;;  %v406_v39 = vld [vmem:[%s2904_s10 + $0x50] sm:$0xff] }
  0x9e   : > { %2167 = vmatprep.subr.bf16.mxu0 %v2744_v32  ;;  %2207 = vmatprep.subr.bf16.mxu1 %v2744_v32  ;;  %v438_v40 = vld [vmem:[%s2904_s10 + $0x150] sm:$0xff]  ;;  %v409_v41 = vld [vmem:[%s2904_s10 + $0x68] sm:$0xff]  ;;  %v408_v43 = vld [vmem:[%s2904_s10 + $0x60] sm:$0xff] }
  0x9f   : > { %v441_v42 = vld [vmem:[%s2904_s10 + $0x168] sm:$0xff]  ;;  %v440_v44 = vld [vmem:[%s2904_s10 + $0x160] sm:$0xff]  ;;  %v411_v45 = vld [vmem:[%s2904_s10 + $0x78] sm:$0xff] }
  0xa0   : > { %v443_v46 = vld [vmem:[%s2904_s10 + $0x178] sm:$0xff]  ;;  %v410_v47 = vld [vmem:[%s2904_s10 + $0x70] sm:$0xff]  ;;  %v445_v50 = vld [vmem:[%s2904_s10 + $0x188] sm:$0xff] }
  0xa1   : > { %2169 = vmatpush1.bf16.msra.mxu0 %v2168_v49  ;;  %2223 = vmatpush1.bf16.msra.mxu1 %v2168_v49  ;;  %v442_v48 = vld [vmem:[%s2904_s10 + $0x170] sm:$0xff]  ;;  %v413_v49 = vld [vmem:[%s2904_s10 + $0x88] sm:$0xff]  ;;  %v412_v51 = vld [vmem:[%s2904_s10 + $0x80] sm:$0xff] }
  0xa2   : > { %2170 = vmatprep.subr.bf16.mxu0 %v2744_v32  ;;  %2208 = vmatprep.subr.bf16.mxu1 %v2744_v32  ;;  %v415_v53 = vld [vmem:[%s2904_s10 + $0x98] sm:$0xff]  ;;  %v446_v56 = vld [vmem:[%s2904_s10 + $0x190] sm:$0xff]  ;;  %v417_v57 = vld [vmem:[%s2904_s10 + $0xa8] sm:$0xff] }
  0xa3   : > { %v447_v54 = vld [vmem:[%s2904_s10 + $0x198] sm:$0xff]  ;;  %v416_v59 = vld [vmem:[%s2904_s10 + $0xa0] sm:$0xff]  ;;  %v418_v63 = vld [vmem:[%s2904_s10 + $0xb0] sm:$0xff] }
  0xa4   : > { %v448_v60 = vld [vmem:[%s2904_s10 + $0x1a0] sm:$0xff]  ;;  %v451_v62 = vld [vmem:[%s2904_s10 + $0x1b8] sm:$0xff]  ;;  %v421_v1 = vld [vmem:[%s2904_s10 + $0xc8] sm:$0xff] }
  0xa5   : > { %2172 = vmatpush1.bf16.msra.mxu0 %v2171_v52  ;;  %2224 = vmatpush1.bf16.msra.mxu1 %v2171_v52  ;;  %v444_v52 = vld [vmem:[%s2904_s10 + $0x180] sm:$0xff]  ;;  %v453_v2 = vld [vmem:[%s2904_s10 + $0x1c8] sm:$0xff]  ;;  %v423_v5 = vld [vmem:[%s2904_s10 + $0xd8] sm:$0xff] }
  0xa6   : > { %2173 = vmatprep.subr.bf16.mxu0 %v2744_v32  ;;  %2209 = vmatprep.subr.bf16.mxu1 %v2744_v32  ;;  %v452_v4 = vld [vmem:[%s2904_s10 + $0x1c0] sm:$0xff]  ;;  %v422_v7 = vld [vmem:[%s2904_s10 + $0xd0] sm:$0xff]  ;;  %v457_v10 = vld [vmem:[%s2904_s10 + $0x1e8] sm:$0xff] }
  0xa7   : > { %v454_v8 = vld [vmem:[%s2904_s10 + $0x1d0] sm:$0xff]  ;;  %v424_v11 = vld [vmem:[%s2904_s10 + $0xe0] sm:$0xff]  ;;  %v427_v13 = vld [vmem:[%s2904_s10 + $0xf8] sm:$0xff] }
  0xa8   : > { %v459_v14 = vld [vmem:[%s2904_s10 + $0x1f8] sm:$0xff]  ;;  %v458_v16 = vld [vmem:[%s2904_s10 + $0x1f0] sm:$0xff] }
  0xa9   : > { %2175 = vmatpush1.bf16.msra.mxu0 %v2174_v55  ;;  %2225 = vmatpush1.bf16.msra.mxu1 %v2174_v55  ;;  %v414_v55 = vld [vmem:[%s2904_s10 + $0x90] sm:$0xff] }
  0xaa   : > { %2176 = vmatprep.subr.bf16.mxu0 %v2744_v32  ;;  %2210 = vmatprep.subr.bf16.mxu1 %v2744_v32 }
  0xad   : > { %2178 = vmatpush1.bf16.msra.mxu0 %v2177_v58  ;;  %2226 = vmatpush1.bf16.msra.mxu1 %v2177_v58  ;;  %v449_v58 = vld [vmem:[%s2904_s10 + $0x1a8] sm:$0xff] }
  0xae   : > { %2179 = vmatprep.subr.bf16.mxu0 %v2744_v32  ;;  %2211 = vmatprep.subr.bf16.mxu1 %v2744_v32 }
  0xb1   : > { %2181 = vmatpush1.bf16.msra.mxu0 %v2180_v61  ;;  %2227 = vmatpush1.bf16.msra.mxu1 %v2180_v61  ;;  %v419_v61 = vld [vmem:[%s2904_s10 + $0xb8] sm:$0xff] }
  0xb2   : > { %2182 = vmatprep.subr.bf16.mxu0 %v2744_v32  ;;  %2212 = vmatprep.subr.bf16.mxu1 %v2744_v32 }
  0xb5   : > { %2184 = vmatpush1.bf16.msra.mxu0 %v2183_v0  ;;  %2228 = vmatpush1.bf16.msra.mxu1 %v2183_v0  ;;  %v450_v0 = vld [vmem:[%s2904_s10 + $0x1b0] sm:$0xff] }
  0xb6   : > { %2185 = vmatprep.subr.bf16.mxu0 %v2744_v32  ;;  %2213 = vmatprep.subr.bf16.mxu1 %v2744_v32 }
  0xb9   : > { %2187 = vmatpush1.bf16.msra.mxu0 %v2186_v3  ;;  %2229 = vmatpush1.bf16.msra.mxu1 %v2186_v3  ;;  %v420_v3 = vld [vmem:[%s2904_s10 + $0xc0] sm:$0xff] }
  0xba   : > { %2188 = vmatprep.subr.bf16.mxu0 %v2744_v32  ;;  %2214 = vmatprep.subr.bf16.mxu1 %v2744_v32 }
  0xbd   : > { %2190 = vmatpush1.bf16.msra.mxu0 %v2189_v6  ;;  %2230 = vmatpush1.bf16.msra.mxu1 %v2189_v6  ;;  %v455_v6 = vld [vmem:[%s2904_s10 + $0x1d8] sm:$0xff] }
  0xbe   : > { %2191 = vmatprep.subr.bf16.mxu0 %v2744_v32  ;;  %2215 = vmatprep.subr.bf16.mxu1 %v2744_v32 }
  0xc1   : > { %2193 = vmatpush1.bf16.msra.mxu0 %v2192_v9  ;;  %2231 = vmatpush1.bf16.msra.mxu1 %v2192_v9  ;;  %v425_v9 = vld [vmem:[%s2904_s10 + $0xe8] sm:$0xff] }
  0xc2   : > { %2194 = vmatprep.subr.bf16.mxu0 %v2744_v32  ;;  %2216 = vmatprep.subr.bf16.mxu1 %v2744_v32 }
  0xc5   : > { %2196 = vmatpush1.bf16.msra.mxu0 %v2195_v12  ;;  %2232 = vmatpush1.bf16.msra.mxu1 %v2195_v12  ;;  %v456_v12 = vld [vmem:[%s2904_s10 + $0x1e0] sm:$0xff] }
  0xc6   : > { %2197 = vmatprep.subr.bf16.mxu0 %v2744_v32  ;;  %2217 = vmatprep.subr.bf16.mxu1 %v2744_v32 }
  0xc9   : > { %2199 = vmatpush1.bf16.msra.mxu0 %v2198_v15  ;;  %2233 = vmatpush1.bf16.msra.mxu1 %v2198_v15  ;;  %v426_v15 = vld [vmem:[%s2904_s10 + $0xf0] sm:$0xff] }
  0xca   : > { %2200 = vmatprep.subr.bf16.mxu0 %v2744_v32  ;;  %2218 = vmatprep.subr.bf16.mxu1 %v2744_v32  ;;  %v434_v32 = vld [vmem:[%s2904_s10 + $0x130] sm:$0xff] }
  0xcd   : > { %2202 = vmatpush1.bf16.msra.mxu0 %v2201_v18  ;;  %2234 = vmatpush1.bf16.msra.mxu1 %v2201_v18 }
  0xd0   : > { %568 = vmatmul.mubr.f32.vlgmr.msra.gmra.mrb[0].mxu0 %v396_v19  ;;  %648 = vmatmul.mubr.f32.vlgmr.msra.gmra.mrb[0].mxu1 %v428_v20 }
  0xd1   : > { %572 = vmatprep.mubr.f32.mxu0 %v399_v21  ;;  %652 = vmatprep.mubr.f32.mxu1 %v431_v22 }
  0xd4   : > { %573 = vmatmul.mubr.f32.gmra.mrb[2].mxu0 %v398_v23  ;;  %653 = vmatmul.mubr.f32.gmra.mrb[2].mxu1 %v430_v24 }
  0xd5   : > { %577 = vmatprep.mubr.f32.mxu0 %v401_v25  ;;  %657 = vmatprep.mubr.f32.mxu1 %v433_v26 }
  0xd8   : > { %578 = vmatmul.mubr.f32.gmra.mrb[4].mxu0 %v400_v27  ;;  %658 = vmatmul.mubr.f32.gmra.mrb[4].mxu1 %v432_v28 }
  0xd9   : > { %582 = vmatprep.mubr.f32.mxu0 %v403_v29  ;;  %662 = vmatprep.mubr.f32.mxu1 %v435_v30 }
  0xdc   : > { %583 = vmatmul.mubr.f32.gmra.mrb[6].mxu0 %v402_v31  ;;  %663 = vmatmul.mubr.f32.gmra.mrb[6].mxu1 %v434_v32 }
  0xdd   : > { %587 = vmatprep.mubr.f32.mxu0 %v405_v33  ;;  %667 = vmatprep.mubr.f32.mxu1 %v437_v34 }
  0xe0   : > { %588 = vmatmul.mubr.f32.gmra.mrb[8].mxu0 %v404_v35  ;;  %668 = vmatmul.mubr.f32.gmra.mrb[8].mxu1 %v436_v36 }
  0xe1   : > { %592 = vmatprep.mubr.f32.mxu0 %v407_v37  ;;  %672 = vmatprep.mubr.f32.mxu1 %v439_v38 }
  0xe4   : > { %593 = vmatmul.mubr.f32.gmra.mrb[10].mxu0 %v406_v39  ;;  %673 = vmatmul.mubr.f32.gmra.mrb[10].mxu1 %v438_v40 }
  0xe5   : > { %597 = vmatprep.mubr.f32.mxu0 %v409_v41  ;;  %677 = vmatprep.mubr.f32.mxu1 %v441_v42 }
  0xe8   : > { %598 = vmatmul.mubr.f32.gmra.mrb[12].mxu0 %v408_v43  ;;  %678 = vmatmul.mubr.f32.gmra.mrb[12].mxu1 %v440_v44 }
  0xe9   : > { %602 = vmatprep.mubr.f32.mxu0 %v411_v45  ;;  %682 = vmatprep.mubr.f32.mxu1 %v443_v46 }
  0xec   : > { %603 = vmatmul.mubr.f32.gmra.mrb[14].mxu0 %v410_v47  ;;  %683 = vmatmul.mubr.f32.gmra.mrb[14].mxu1 %v442_v48 }
  0xed   : > { %607 = vmatprep.mubr.f32.mxu0 %v413_v49  ;;  %687 = vmatprep.mubr.f32.mxu1 %v445_v50 }
  0xf0   : > { %608 = vmatmul.mubr.f32.gmra.mrb[16].mxu0 %v412_v51  ;;  %688 = vmatmul.mubr.f32.gmra.mrb[16].mxu1 %v444_v52 }
  0xf1   : > { %612 = vmatprep.mubr.f32.mxu0 %v415_v53  ;;  %692 = vmatprep.mubr.f32.mxu1 %v447_v54 }
  0xf4   : > { %613 = vmatmul.mubr.f32.gmra.mrb[18].mxu0 %v414_v55  ;;  %693 = vmatmul.mubr.f32.gmra.mrb[18].mxu1 %v446_v56 }
  0xf5   : > { %617 = vmatprep.mubr.f32.mxu0 %v417_v57  ;;  %697 = vmatprep.mubr.f32.mxu1 %v449_v58 }
  0xf8   : > { %618 = vmatmul.mubr.f32.gmra.mrb[20].mxu0 %v416_v59  ;;  %698 = vmatmul.mubr.f32.gmra.mrb[20].mxu1 %v448_v60 }
  0xf9   : > { %622 = vmatprep.mubr.f32.mxu0 %v419_v61  ;;  %702 = vmatprep.mubr.f32.mxu1 %v451_v62 }
  0xfc   : > { %623 = vmatmul.mubr.f32.gmra.mrb[22].mxu0 %v418_v63  ;;  %703 = vmatmul.mubr.f32.gmra.mrb[22].mxu1 %v450_v0 }
  0xfd   : > { %627 = vmatprep.mubr.f32.mxu0 %v421_v1  ;;  %707 = vmatprep.mubr.f32.mxu1 %v453_v2 }
 0x100   : > { %628 = vmatmul.mubr.f32.gmra.mrb[24].mxu0 %v420_v3  ;;  %708 = vmatmul.mubr.f32.gmra.mrb[24].mxu1 %v452_v4 }
 0x101   : > { %632 = vmatprep.mubr.f32.mxu0 %v423_v5  ;;  %712 = vmatprep.mubr.f32.mxu1 %v455_v6 }
 0x104   : > { %633 = vmatmul.mubr.f32.gmra.mrb[26].mxu0 %v422_v7  ;;  %713 = vmatmul.mubr.f32.gmra.mrb[26].mxu1 %v454_v8 }
 0x105   : > { %637 = vmatprep.mubr.f32.mxu0 %v425_v9  ;;  %717 = vmatprep.mubr.f32.mxu1 %v457_v10 }
 0x108   : > { %638 = vmatmul.mubr.f32.gmra.mrb[28].mxu0 %v424_v11  ;;  %718 = vmatmul.mubr.f32.gmra.mrb[28].mxu1 %v456_v12 }
 0x109   : > { %642 = vmatprep.mubr.f32.mxu0 %v427_v13  ;;  %722 = vmatprep.mubr.f32.mxu1 %v459_v14 }
 0x10c   : > { %643 = vmatmul.mubr.f32.gmra.mrb[30].mxu0 %v426_v15  ;;  %723 = vmatmul.mubr.f32.gmra.mrb[30].mxu1 %v458_v16 }
 0x1a3   : > { %v3034_v17 = vpop.f32.mrb[0].mxu0  ;;  %v3036_v18 = vpop.f32.mrb[0].mxu1 }
 0x1a4   : > { %v571_v19 = vpop.f32.mrb[1].mxu0  ;;  %v651_v20 = vpop.f32.mrb[1].mxu1  ;;  %731 = vst [vmem:[#allocation3] sm:$0xff] (!%p2080_p1), %v3034_v17  ;;  %747 = vst [vmem:[#allocation3 + $0x80] sm:$0xff] (!%p2080_p1), %v3036_v18 }
 0x1a7   : > { %v3038_v21 = vpop.f32.mrb[2].mxu0  ;;  %v3040_v22 = vpop.f32.mrb[2].mxu1 }
 0x1a8   : > { %v576_v23 = vpop.f32.mrb[3].mxu0  ;;  %v656_v24 = vpop.f32.mrb[3].mxu1  ;;  %732 = vst [vmem:[#allocation3 + $0x8] sm:$0xff] (!%p2080_p1), %v3038_v21  ;;  %748 = vst [vmem:[#allocation3 + $0x88] sm:$0xff] (!%p2080_p1), %v3040_v22 }
 0x1ab   : > { %v3042_v25 = vpop.f32.mrb[4].mxu0  ;;  %v3044_v26 = vpop.f32.mrb[4].mxu1 }
 0x1ac   : > { %v581_v27 = vpop.f32.mrb[5].mxu0  ;;  %v661_v28 = vpop.f32.mrb[5].mxu1  ;;  %733 = vst [vmem:[#allocation3 + $0x10] sm:$0xff] (!%p2080_p1), %v3042_v25  ;;  %749 = vst [vmem:[#allocation3 + $0x90] sm:$0xff] (!%p2080_p1), %v3044_v26 }
 0x1af   : > { %v3046_v29 = vpop.f32.mrb[6].mxu0  ;;  %v3048_v30 = vpop.f32.mrb[6].mxu1 }
 0x1b0   : > { %v586_v31 = vpop.f32.mrb[7].mxu0  ;;  %v666_v32 = vpop.f32.mrb[7].mxu1  ;;  %734 = vst [vmem:[#allocation3 + $0x18] sm:$0xff] (!%p2080_p1), %v3046_v29  ;;  %750 = vst [vmem:[#allocation3 + $0x98] sm:$0xff] (!%p2080_p1), %v3048_v30 }
 0x1b3   : > { %v3050_v33 = vpop.f32.mrb[8].mxu0  ;;  %v3052_v34 = vpop.f32.mrb[8].mxu1 }
 0x1b4   : > { %v591_v35 = vpop.f32.mrb[9].mxu0  ;;  %v671_v36 = vpop.f32.mrb[9].mxu1  ;;  %735 = vst [vmem:[#allocation3 + $0x20] sm:$0xff] (!%p2080_p1), %v3050_v33  ;;  %751 = vst [vmem:[#allocation3 + $0xa0] sm:$0xff] (!%p2080_p1), %v3052_v34 }
 0x1b7   : > { %v3054_v37 = vpop.f32.mrb[10].mxu0  ;;  %v3056_v38 = vpop.f32.mrb[10].mxu1 }
 0x1b8   : > { %v596_v39 = vpop.f32.mrb[11].mxu0  ;;  %v676_v40 = vpop.f32.mrb[11].mxu1  ;;  %736 = vst [vmem:[#allocation3 + $0x28] sm:$0xff] (!%p2080_p1), %v3054_v37  ;;  %752 = vst [vmem:[#allocation3 + $0xa8] sm:$0xff] (!%p2080_p1), %v3056_v38 }
 0x1bb   : > { %v3058_v41 = vpop.f32.mrb[12].mxu0  ;;  %v3060_v42 = vpop.f32.mrb[12].mxu1 }
 0x1bc   : > { %v601_v43 = vpop.f32.mrb[13].mxu0  ;;  %v681_v44 = vpop.f32.mrb[13].mxu1  ;;  %737 = vst [vmem:[#allocation3 + $0x30] sm:$0xff] (!%p2080_p1), %v3058_v41  ;;  %753 = vst [vmem:[#allocation3 + $0xb0] sm:$0xff] (!%p2080_p1), %v3060_v42 }
 0x1bf   : > { %v3062_v45 = vpop.f32.mrb[14].mxu0  ;;  %v3064_v46 = vpop.f32.mrb[14].mxu1 }
 0x1c0   : > { %v606_v47 = vpop.f32.mrb[15].mxu0  ;;  %v686_v48 = vpop.f32.mrb[15].mxu1  ;;  %738 = vst [vmem:[#allocation3 + $0x38] sm:$0xff] (!%p2080_p1), %v3062_v45  ;;  %754 = vst [vmem:[#allocation3 + $0xb8] sm:$0xff] (!%p2080_p1), %v3064_v46 }
 0x1c3   : > { %v3066_v49 = vpop.f32.mrb[16].mxu0  ;;  %v3068_v50 = vpop.f32.mrb[16].mxu1 }
 0x1c4   : > { %v611_v51 = vpop.f32.mrb[17].mxu0  ;;  %v691_v52 = vpop.f32.mrb[17].mxu1  ;;  %739 = vst [vmem:[#allocation3 + $0x40] sm:$0xff] (!%p2080_p1), %v3066_v49  ;;  %755 = vst [vmem:[#allocation3 + $0xc0] sm:$0xff] (!%p2080_p1), %v3068_v50 }
 0x1c7   : > { %v3070_v53 = vpop.f32.mrb[18].mxu0  ;;  %v3072_v54 = vpop.f32.mrb[18].mxu1 }
 0x1c8   : > { %v616_v55 = vpop.f32.mrb[19].mxu0  ;;  %v696_v56 = vpop.f32.mrb[19].mxu1  ;;  %740 = vst [vmem:[#allocation3 + $0x48] sm:$0xff] (!%p2080_p1), %v3070_v53  ;;  %756 = vst [vmem:[#allocation3 + $0xc8] sm:$0xff] (!%p2080_p1), %v3072_v54 }
 0x1cb   : > { %v3074_v57 = vpop.f32.mrb[20].mxu0  ;;  %v3076_v58 = vpop.f32.mrb[20].mxu1 }
 0x1cc   : > { %v621_v59 = vpop.f32.mrb[21].mxu0  ;;  %v701_v60 = vpop.f32.mrb[21].mxu1  ;;  %741 = vst [vmem:[#allocation3 + $0x50] sm:$0xff] (!%p2080_p1), %v3074_v57  ;;  %757 = vst [vmem:[#allocation3 + $0xd0] sm:$0xff] (!%p2080_p1), %v3076_v58 }
 0x1cf   : > { %v3078_v61 = vpop.f32.mrb[22].mxu0  ;;  %v3080_v62 = vpop.f32.mrb[22].mxu1 }
 0x1d0   : > { %v626_v63 = vpop.f32.mrb[23].mxu0  ;;  %v706_v0 = vpop.f32.mrb[23].mxu1  ;;  %742 = vst [vmem:[#allocation3 + $0x58] sm:$0xff] (!%p2080_p1), %v3078_v61  ;;  %758 = vst [vmem:[#allocation3 + $0xd8] sm:$0xff] (!%p2080_p1), %v3080_v62 }
 0x1d3   : > { %v3082_v1 = vpop.f32.mrb[24].mxu0  ;;  %v3084_v2 = vpop.f32.mrb[24].mxu1 }
 0x1d4   : > { %v631_v3 = vpop.f32.mrb[25].mxu0  ;;  %v711_v4 = vpop.f32.mrb[25].mxu1  ;;  %743 = vst [vmem:[#allocation3 + $0x60] sm:$0xff] (!%p2080_p1), %v3082_v1  ;;  %759 = vst [vmem:[#allocation3 + $0xe0] sm:$0xff] (!%p2080_p1), %v3084_v2 }
 0x1d7   : > { %v3086_v5 = vpop.f32.mrb[26].mxu0  ;;  %v3088_v6 = vpop.f32.mrb[26].mxu1 }
 0x1d8   : > { %v636_v7 = vpop.f32.mrb[27].mxu0  ;;  %v716_v8 = vpop.f32.mrb[27].mxu1  ;;  %744 = vst [vmem:[#allocation3 + $0x68] sm:$0xff] (!%p2080_p1), %v3086_v5  ;;  %760 = vst [vmem:[#allocation3 + $0xe8] sm:$0xff] (!%p2080_p1), %v3088_v6 }
 0x1da   : > { %730 = sbr.rel (%p2080_p1) target bundleno = 481 (0x1e1), region = 48 }
 0x1db   : > { %v3090_v9 = vpop.f32.mrb[28].mxu0  ;;  %v3092_v10 = vpop.f32.mrb[28].mxu1 }
 0x1dc   : > { %v641_v11 = vpop.f32.mrb[29].mxu0  ;;  %v721_v12 = vpop.f32.mrb[29].mxu1  ;;  %745 = vst [vmem:[#allocation3 + $0x70] sm:$0xff] (!%p2080_p1), %v3090_v9  ;;  %761 = vst [vmem:[#allocation3 + $0xf0] sm:$0xff] (!%p2080_p1), %v3092_v10 }
 0x1df   : > { %v3094_v13 = vpop.f32.mrb[30].mxu0  ;;  %v3096_v14 = vpop.f32.mrb[30].mxu1 }
 0x1e0   : > { %v646_v15 = vpop.f32.mrb[31].mxu0  ;;  %v726_v16 = vpop.f32.mrb[31].mxu1  ;;  %746 = vst [vmem:[#allocation3 + $0x78] sm:$0xff] (!%p2080_p1), %v3094_v13  ;;  %762 = vst [vmem:[#allocation3 + $0xf8] sm:$0xff] (!%p2080_p1), %v3096_v14 }
 0x1e1 PF: > { %p2081_p2 = scmp.le.s32.totalorder %s2712_s14, 0 }
 0x1e2   : > { %v767_v19 = vld [vmem:[#allocation3] sm:$0xff] (!%p2081_p2)  ;;  %v768_v20 = vld [vmem:[#allocation3 + $0x8] sm:$0xff] (!%p2081_p2)  ;;  %v769_v23 = vld [vmem:[#allocation3 + $0x10] sm:$0xff] (!%p2081_p2) }
 0x1e3   : > { %766 = sbr.rel (%p2081_p2) target bundleno = 501 (0x1f5), region = 52  ;;  %v799_v24 = vadd.f32 (!%p2081_p2), %v767_v19, %v3034_v17  ;;  %v800_v27 = vadd.f32 (!%p2081_p2), %v768_v20, %v3038_v21  ;;  %v801_v28 = vadd.f32 (!%p2081_p2), %v769_v23, %v3042_v25  ;;  %v770_v31 = vld [vmem:[#allocation3 + $0x18] sm:$0xff] (!%p2081_p2)  ;;  %v771_v32 = vld [vmem:[#allocation3 + $0x20] sm:$0xff] (!%p2081_p2)  ;;  %v772_v35 = vld [vmem:[#allocation3 + $0x28] sm:$0xff] (!%p2081_p2) }
 0x1e4   : > { %v802_v36 = vadd.f32 (!%p2081_p2), %v770_v31, %v3046_v29  ;;  %v803_v39 = vadd.f32 (!%p2081_p2), %v771_v32, %v3050_v33  ;;  %v804_v40 = vadd.f32 (!%p2081_p2), %v772_v35, %v3054_v37  ;;  %v773_v43 = vld [vmem:[#allocation3 + $0x30] sm:$0xff] (!%p2081_p2)  ;;  %v774_v44 = vld [vmem:[#allocation3 + $0x38] sm:$0xff] (!%p2081_p2)  ;;  %v775_v47 = vld [vmem:[#allocation3 + $0x40] sm:$0xff] (!%p2081_p2) }
 0x1e5   : > { %831 = vst [vmem:[#allocation3] sm:$0xff] (!%p2081_p2), %v799_v24  ;;  %832 = vst [vmem:[#allocation3 + $0x8] sm:$0xff] (!%p2081_p2), %v800_v27  ;;  %v805_v17 = vadd.f32 (!%p2081_p2), %v773_v43, %v3058_v41  ;;  %v806_v21 = vadd.f32 (!%p2081_p2), %v774_v44, %v3062_v45  ;;  %v807_v25 = vadd.f32 (!%p2081_p2), %v775_v47, %v3066_v49  ;;  %v776_v48 = vld [vmem:[#allocation3 + $0x48] sm:$0xff] (!%p2081_p2)  ;;  %v777_v51 = vld [vmem:[#allocation3 + $0x50] sm:$0xff] (!%p2081_p2) }
 0x1e6   : > { %833 = vst [vmem:[#allocation3 + $0x10] sm:$0xff] (!%p2081_p2), %v801_v28  ;;  %v778_v52 = vld [vmem:[#allocation3 + $0x58] sm:$0xff] (!%p2081_p2)  ;;  %834 = vst [vmem:[#allocation3 + $0x18] sm:$0xff] (!%p2081_p2), %v802_v36  ;;  %v808_v29 = vadd.f32 (!%p2081_p2), %v776_v48, %v3070_v53  ;;  %v809_v33 = vadd.f32 (!%p2081_p2), %v777_v51, %v3074_v57  ;;  %v779_v55 = vld [vmem:[#allocation3 + $0x60] sm:$0xff] (!%p2081_p2) }
 0x1e7   : > { %835 = vst [vmem:[#allocation3 + $0x20] sm:$0xff] (!%p2081_p2), %v803_v39  ;;  %836 = vst [vmem:[#allocation3 + $0x28] sm:$0xff] (!%p2081_p2), %v804_v40  ;;  %v810_v37 = vadd.f32 (!%p2081_p2), %v778_v52, %v3078_v61  ;;  %v780_v56 = vld [vmem:[#allocation3 + $0x68] sm:$0xff] (!%p2081_p2)  ;;  %v781_v59 = vld [vmem:[#allocation3 + $0x70] sm:$0xff] (!%p2081_p2)  ;;  %v811_v41 = vadd.f32 (!%p2081_p2), %v779_v55, %v3082_v1 }
 0x1e8   : > { %837 = vst [vmem:[#allocation3 + $0x30] sm:$0xff] (!%p2081_p2), %v805_v17  ;;  %838 = vst [vmem:[#allocation3 + $0x38] sm:$0xff] (!%p2081_p2), %v806_v21  ;;  %v812_v45 = vadd.f32 (!%p2081_p2), %v780_v56, %v3086_v5  ;;  %v813_v49 = vadd.f32 (!%p2081_p2), %v781_v59, %v3090_v9  ;;  %v782_v60 = vld [vmem:[#allocation3 + $0x78] sm:$0xff] (!%p2081_p2)  ;;  %v783_v63 = vld [vmem:[#allocation3 + $0x80] sm:$0xff] (!%p2081_p2) }
 0x1e9   : > { %839 = vst [vmem:[#allocation3 + $0x40] sm:$0xff] (!%p2081_p2), %v807_v25  ;;  %v784_v0 = vld [vmem:[#allocation3 + $0x88] sm:$0xff] (!%p2081_p2)  ;;  %840 = vst [vmem:[#allocation3 + $0x48] sm:$0xff] (!%p2081_p2), %v808_v29  ;;  %v814_v53 = vadd.f32 (!%p2081_p2), %v782_v60, %v3094_v13  ;;  %v815_v57 = vadd.f32 (!%p2081_p2), %v783_v63, %v3036_v18  ;;  %v785_v3 = vld [vmem:[#allocation3 + $0x90] sm:$0xff] (!%p2081_p2) }
 0x1ea   : > { %841 = vst [vmem:[#allocation3 + $0x50] sm:$0xff] %v809_v33  ;;  %842 = vst [vmem:[#allocation3 + $0x58] sm:$0xff] %v810_v37  ;;  %v816_v61 = vadd.f32 %v784_v0, %v3040_v22  ;;  %v786_v4 = vld [vmem:[#allocation3 + $0x98] sm:$0xff]  ;;  %v787_v7 = vld [vmem:[#allocation3 + $0xa0] sm:$0xff]  ;;  %v817_v1 = vadd.f32 %v785_v3, %v3044_v26 }
 0x1eb   : > { %843 = vst [vmem:[#allocation3 + $0x60] sm:$0xff] %v811_v41  ;;  %844 = vst [vmem:[#allocation3 + $0x68] sm:$0xff] %v812_v45  ;;  %v818_v5 = vadd.f32 %v786_v4, %v3048_v30  ;;  %v819_v8 = vadd.f32 %v787_v7, %v3052_v34  ;;  %v788_v9 = vld [vmem:[#allocation3 + $0xa8] sm:$0xff]  ;;  %v789_v11 = vld [vmem:[#allocation3 + $0xb0] sm:$0xff] }
 0x1ec   : > { %845 = vst [vmem:[#allocation3 + $0x70] sm:$0xff] %v813_v49  ;;  %v790_v12 = vld [vmem:[#allocation3 + $0xb8] sm:$0xff]  ;;  %846 = vst [vmem:[#allocation3 + $0x78] sm:$0xff] %v814_v53  ;;  %v820_v18 = vadd.f32 %v788_v9, %v3056_v38  ;;  %v821_v22 = vadd.f32 %v789_v11, %v3060_v42  ;;  %v791_v15 = vld [vmem:[#allocation3 + $0xc0] sm:$0xff] }
 0x1ed   : > { %847 = vst [vmem:[#allocation3 + $0x80] sm:$0xff] %v815_v57  ;;  %848 = vst [vmem:[#allocation3 + $0x88] sm:$0xff] %v816_v61  ;;  %v822_v13 = vadd.f32 %v790_v12, %v3064_v46  ;;  %v792_v16 = vld [vmem:[#allocation3 + $0xc8] sm:$0xff]  ;;  %v793_v19 = vld [vmem:[#allocation3 + $0xd0] sm:$0xff]  ;;  %v823_v26 = vadd.f32 %v791_v15, %v3068_v50 }
 0x1ee   : > { %849 = vst [vmem:[#allocation3 + $0x90] sm:$0xff] %v817_v1  ;;  %850 = vst [vmem:[#allocation3 + $0x98] sm:$0xff] %v818_v5  ;;  %v824_v30 = vadd.f32 %v792_v16, %v3072_v54  ;;  %v825_v34 = vadd.f32 %v793_v19, %v3076_v58  ;;  %v794_v20 = vld [vmem:[#allocation3 + $0xd8] sm:$0xff]  ;;  %v795_v23 = vld [vmem:[#allocation3 + $0xe0] sm:$0xff] }
 0x1ef   : > { %851 = vst [vmem:[#allocation3 + $0xa0] sm:$0xff] %v819_v8  ;;  %v796_v24 = vld [vmem:[#allocation3 + $0xe8] sm:$0xff]  ;;  %852 = vst [vmem:[#allocation3 + $0xa8] sm:$0xff] %v820_v18  ;;  %v826_v38 = vadd.f32 %v794_v20, %v3080_v62  ;;  %v827_v42 = vadd.f32 %v795_v23, %v3084_v2  ;;  %v797_v27 = vld [vmem:[#allocation3 + $0xf0] sm:$0xff] }
 0x1f0   : > { %853 = vst [vmem:[#allocation3 + $0xb0] sm:$0xff] %v821_v22  ;;  %854 = vst [vmem:[#allocation3 + $0xb8] sm:$0xff] %v822_v13  ;;  %v828_v46 = vadd.f32 %v796_v24, %v3088_v6  ;;  %v798_v28 = vld [vmem:[#allocation3 + $0xf8] sm:$0xff]  ;;  %v829_v50 = vadd.f32 %v797_v27, %v3092_v10 }
 0x1f1   : > { %855 = vst [vmem:[#allocation3 + $0xc0] sm:$0xff] %v823_v26  ;;  %856 = vst [vmem:[#allocation3 + $0xc8] sm:$0xff] %v824_v30  ;;  %v830_v54 = vadd.f32 %v798_v28, %v3096_v14 }
 0x1f2   : > { %857 = vst [vmem:[#allocation3 + $0xd0] sm:$0xff] %v825_v34  ;;  %858 = vst [vmem:[#allocation3 + $0xd8] sm:$0xff] %v826_v38 }
 0x1f3   : > { %859 = vst [vmem:[#allocation3 + $0xe0] sm:$0xff] %v827_v42  ;;  %860 = vst [vmem:[#allocation3 + $0xe8] sm:$0xff] %v828_v46 }
 0x1f4   : > { %861 = vst [vmem:[#allocation3 + $0xf0] sm:$0xff] %v829_v50  ;;  %862 = vst [vmem:[#allocation3 + $0xf8] sm:$0xff] %v830_v54 }
 0x1f5 PF: > { %p2082_p3 = scmp.ne.s32.totalorder %s2712_s14, 2 }
 0x1f7   : > { %866 = sbr.rel (%p2082_p3) target bundleno = 989 (0x3dd), region = 56 }
 0x1fe   : > { %s867_s15 = sld [smem:[#allocation4]]  ;;  %v2745_v58 = vmov 32   ;;  %p900_p6 = scmp.lt.s32.totalorder %s2720_s16, 0  ;;  %v3168_v62 = vld [vmem:[#allocation3 + $0x10] sm:$0xff]  ;;  %v3170_v2 = vld [vmem:[#allocation3] sm:$0xff]  ;;  %v3172_v6 = vld [vmem:[#allocation3 + $0x18] sm:$0xff] }
 0x1ff   : > { %2329 = vset.pattern.permute.xlu1 %v2745_v58  ;;  %2328 = vset.pattern.permute.xlu0 %v2745_v58  ;;  %s901_s12 = ssub.s32 0, %s2720_s16  ;;  %v3174_v10 = vld [vmem:[#allocation3 + $0x8] sm:$0xff]  ;;  %v3180_v31 = vld [vmem:[#allocation3 + $0x20] sm:$0xff]  ;;  %v3184_v35 = vld [vmem:[#allocation3 + $0x38] sm:$0xff]  ;;  %p2116_p7 = scmp.ne.s32.totalorder %s2720_s16, 0 }
 0x200   : > { %s2083_s13 = smin.u32 %s2720_s16, %s901_s12  ;;  %v3178_v14 = vld [vmem:[#allocation3 + $0x28] sm:$0xff]  ;;  %v3195_v44 = vld [vmem:[#allocation3 + $0x30] sm:$0xff]  ;;  %v3199_v17 = vld [vmem:[#allocation3 + $0x40] sm:$0xff] }
 0x201   : > { %s903_s24 = sand.u32 1, %s2083_s13   ;;  %v3197_v47 = vld [vmem:[#allocation3 + $0x48] sm:$0xff]  ;;  %v3205_v48 = vld [vmem:[#allocation3 + $0x58] sm:$0xff]  ;;  %v3207_v51 = vld [vmem:[#allocation3 + $0x50] sm:$0xff] }
 0x202   : > { %s904_s25 = ssub.s32 0, %s903_s24  ;;  %v3209_v52 = vld [vmem:[#allocation3 + $0x68] sm:$0xff]  ;;  %v3211_v29 = vld [vmem:[#allocation3 + $0x60] sm:$0xff]  ;;  %v3213_v33 = vld [vmem:[#allocation3 + $0x78] sm:$0xff] }
 0x203   : > { %s3971_s25 = smov (!%p900_p6, %s904_s25), %s903_s24  ;;  %v3215_v37 = vld [vmem:[#allocation3 + $0x70] sm:$0xff]  ;;  %v3217_v55 = vld [vmem:[#allocation3 + $0x88] sm:$0xff]  ;;  %v3219_v56 = vld [vmem:[#allocation3 + $0x80] sm:$0xff] }
 0x204   : > { %v3182_v32 = vstv %s867_s15  ;;  %s906_s14 = smul.u32 768, %s3971_s25  ;;  %v3221_v59 = vld [vmem:[#allocation3 + $0x98] sm:$0xff]  ;;  %v3223_v41 = vld [vmem:[#allocation3 + $0x90] sm:$0xff]  ;;  %v3225_v45 = vld [vmem:[#allocation3 + $0xa8] sm:$0xff] }
 0x205   : > { %v944_v36 = vadd.f32 %v3182_v32, %v3168_v62  ;;  %v942_v39 = vadd.f32 %v3182_v32, %v3170_v2  ;;  %v945_v40 = vadd.f32 %v3182_v32, %v3172_v6  ;;  %v943_v43 = vadd.f32 %v3182_v32, %v3174_v10  ;;  %v3227_v49 = vld [vmem:[#allocation3 + $0xa0] sm:$0xff]  ;;  %v3229_v60 = vld [vmem:[#allocation3 + $0xb8] sm:$0xff]  ;;  %v3231_v63 = vld [vmem:[#allocation3 + $0xb0] sm:$0xff] }
 0x206   : > { %v947_v21 = vadd.f32 %v3182_v32, %v3178_v14  ;;  %v946_v25 = vadd.f32 %v3182_v32, %v3180_v31  ;;  %s907_s28 = sadd.s32 %s2900_s30, %s906_s14  ;;  %v949_v61 = vadd.f32 %v3182_v32, %v3184_v35  ;;  %v948_v4 = vadd.f32 %v3182_v32, %v3195_v44  ;;  %v3238_v7 = vld [vmem:[#allocation3 + $0xc8] sm:$0xff]  ;;  %v3240_v1 = vld [vmem:[#allocation3 + $0xc0] sm:$0xff]  ;;  %v3242_v5 = vld [vmem:[#allocation3 + $0xd8] sm:$0xff] }
 0x207   : > { %v2086_v0 = vmul.f32 -1.442695, %v944_v36  ;;  %v2084_v53 = vmul.f32 -1.442695, %v942_v39  ;;  %v2087_v57 = vmul.f32 -1.442695, %v945_v40  ;;  %v951_v9 = vadd.f32 %v3182_v32, %v3197_v47 }
 0x208   : > { %v2085_v3 = vmul.f32 -1.442695, %v943_v43  ;;  %s3244_s26 = scalar_lea.vmem [#allocation2], %s907_s28  ;;  %v2089_v8 = vmul.f32 -1.442695, %v947_v21  ;;  %v950_v12 = vadd.f32 %v3182_v32, %v3199_v17  ;;  %v953_v22 = vadd.f32 %v3182_v32, %v3205_v48  ;;  %v3306_v13 = vld [vmem:[#allocation3 + $0xd0] sm:$0xff] }
 0x209   : > { %911 = vst [vmem:[%s3244_s26 + $0x10] sm:$0xff] %v3168_v62  ;;  %2330 = vpow2.f32 %v2086_v0  ;;  %909 = vst [vmem:[%s3244_s26] sm:$0xff] %v3170_v2  ;;  %v2088_v11 = vmul.f32 -1.442695, %v946_v25  ;;  %v2091_v18 = vmul.f32 -1.442695, %v949_v61  ;;  %v3308_v15 = vld [vmem:[#allocation3 + $0xe8] sm:$0xff]  ;;  %v952_v26 = vadd.f32 %v3182_v32, %v3207_v51 }
 0x20a   : > { %912 = vst [vmem:[%s3244_s26 + $0x18] sm:$0xff] %v3172_v6  ;;  %910 = vst [vmem:[%s3244_s26 + $0x8] sm:$0xff] %v3174_v10  ;;  %2332 = vpow2.f32 %v2084_v53  ;;  %v3310_v16 = vld [vmem:[#allocation3 + $0xe0] sm:$0xff]  ;;  %v2090_v19 = vmul.f32 -1.442695, %v948_v4  ;;  %v3320_v30 = vld [vmem:[#allocation3 + $0xf8] sm:$0xff]  ;;  %v955_v23 = vadd.f32 %v3182_v32, %v3209_v52 }
 0x20b   : > { %914 = vst [vmem:[%s3244_s26 + $0x28] sm:$0xff] %v3178_v14  ;;  %913 = vst [vmem:[%s3244_s26 + $0x20] sm:$0xff] %v3180_v31  ;;  %2334 = vpow2.f32 %v2087_v57  ;;  %v3322_v34 = vld [vmem:[#allocation3 + $0xf0] sm:$0xff]  ;;  %v2093_v20 = vmul.f32 -1.442695, %v951_v9 }
 0x20c   : > { %916 = vst [vmem:[%s3244_s26 + $0x38] sm:$0xff] %v3184_v35  ;;  %915 = vst [vmem:[%s3244_s26 + $0x30] sm:$0xff] %v3195_v44  ;;  %2336 = vpow2.f32 %v2085_v3  ;;  %v2092_v24 = vmul.f32 -1.442695, %v950_v12  ;;  %v2095_v38 = vmul.f32 -1.442695, %v953_v22  ;;  %v957_v12 = vadd.f32 %v3182_v32, %v3213_v33 }
 0x20d   : > { %918 = vst [vmem:[%s3244_s26 + $0x48] sm:$0xff] %v3197_v47  ;;  %917 = vst [vmem:[%s3244_s26 + $0x40] sm:$0xff] %v3199_v17  ;;  %2338 = vpow2.f32 %v2089_v8  ;;  %v2094_v42 = vmul.f32 -1.442695, %v952_v26  ;;  %v2097_v46 = vmul.f32 -1.442695, %v955_v23  ;;  %v954_v8 = vadd.f32 %v3182_v32, %v3211_v29 }
 0x20e   : > { %920 = vst [vmem:[%s3244_s26 + $0x58] sm:$0xff] %v3205_v48  ;;  %919 = vst [vmem:[%s3244_s26 + $0x50] sm:$0xff] %v3207_v51  ;;  %2340 = vpow2.f32 %v2088_v11  ;;  %v959_v23 = vadd.f32 %v3182_v32, %v3217_v55 }
 0x20f   : > { %922 = vst [vmem:[%s3244_s26 + $0x68] sm:$0xff] %v3209_v52  ;;  %921 = vst [vmem:[%s3244_s26 + $0x60] sm:$0xff] %v3211_v29  ;;  %2342 = vpow2.f32 %v2091_v18 }
 0x210   : > { %924 = vst [vmem:[%s3244_s26 + $0x78] sm:$0xff] %v3213_v33  ;;  %923 = vst [vmem:[%s3244_s26 + $0x70] sm:$0xff] %v3215_v37  ;;  %2344 = vpow2.f32 %v2090_v19  ;;  %v956_v19 = vadd.f32 %v3182_v32, %v3215_v37 }
 0x211   : > { %926 = vst [vmem:[%s3244_s26 + $0x88] sm:$0xff] %v3217_v55  ;;  %925 = vst [vmem:[%s3244_s26 + $0x80] sm:$0xff] %v3219_v56  ;;  %2346 = vpow2.f32 %v2093_v20 }
 0x212   : > { %928 = vst [vmem:[%s3244_s26 + $0x98] sm:$0xff] %v3221_v59  ;;  %927 = vst [vmem:[%s3244_s26 + $0x90] sm:$0xff] %v3223_v41  ;;  %2348 = vpow2.f32 %v2092_v24 }
 0x213   : > { %930 = vst [vmem:[%s3244_s26 + $0xa8] sm:$0xff] %v3225_v45  ;;  %929 = vst [vmem:[%s3244_s26 + $0xa0] sm:$0xff] %v3227_v49  ;;  %v2331_v27 = vpop.eup %2330  ;;  %2350 = vpow2.f32 %v2095_v38 }
 0x214   : > { %932 = vst [vmem:[%s3244_s26 + $0xb8] sm:$0xff] %v3229_v60  ;;  %931 = vst [vmem:[%s3244_s26 + $0xb0] sm:$0xff] %v3231_v63  ;;  %v2333_v28 = vpop.eup %2332  ;;  %v1072_v50 = vadd.f32 1.0, %v2331_v27  ;;  %2352 = vpow2.f32 %v2094_v42  ;;  %v2096_v42 = vmul.f32 -1.442695, %v954_v8 }
 0x215   : > { %934 = vst [vmem:[%s3244_s26 + $0xc8] sm:$0xff] %v3238_v7  ;;  %933 = vst [vmem:[%s3244_s26 + $0xc0] sm:$0xff] %v3240_v1  ;;  %v2335_v54 = vpop.eup %2334  ;;  %v1070_v58 = vadd.f32 1.0, %v2333_v28  ;;  %2354 = vpow2.f32 %v2097_v46  ;;  %v958_v46 = vadd.f32 %v3182_v32, %v3219_v56 }
 0x216   : > { %936 = vst [vmem:[%s3244_s26 + $0xd8] sm:$0xff] %v3242_v5  ;;  %935 = vst [vmem:[%s3244_s26 + $0xd0] sm:$0xff] %v3306_v13  ;;  %v2337_v36 = vpop.eup %2336  ;;  %2356 = vrcp.f32 %v1072_v50  ;;  %v1073_v39 = vadd.f32 1.0, %v2335_v54  ;;  %v2099_v50 = vmul.f32 -1.442695, %v957_v12  ;;  %v961_v54 = vadd.f32 %v3182_v32, %v3221_v59 }
 0x217   : > { %938 = vst [vmem:[%s3244_s26 + $0xe8] sm:$0xff] %v3308_v15  ;;  %937 = vst [vmem:[%s3244_s26 + $0xe0] sm:$0xff] %v3310_v16  ;;  %v2339_v40 = vpop.eup %2338  ;;  %2358 = vrcp.f32 %v1070_v58  ;;  %v1071_v43 = vadd.f32 1.0, %v2337_v36  ;;  %v2098_v36 = vmul.f32 -1.442695, %v956_v19 }
 0x218   : > { %940 = vst [vmem:[%s3244_s26 + $0xf8] sm:$0xff] %v3320_v30  ;;  %939 = vst [vmem:[%s3244_s26 + $0xf0] sm:$0xff] %v3322_v34  ;;  %v2341_v21 = vpop.eup %2340  ;;  %2360 = vrcp.f32 %v1073_v39  ;;  %v1075_v25 = vadd.f32 1.0, %v2339_v40  ;;  %v960_v39 = vadd.f32 %v3182_v32, %v3223_v41 }
 0x219   : > { %v2343_v0 = vpop.eup %2342  ;;  %2362 = vrcp.f32 %v1071_v43  ;;  %v1074_v53 = vadd.f32 1.0, %v2341_v21  ;;  %v2101_v43 = vmul.f32 -1.442695, %v959_v23  ;;  %v963_v21 = vadd.f32 %v3182_v32, %v3225_v45 }
 0x21a   : > { %v2345_v57 = vpop.eup %2344  ;;  %2364 = vrcp.f32 %v1075_v25  ;;  %v1077_v61 = vadd.f32 1.0, %v2343_v0  ;;  %v2100_v0 = vmul.f32 -1.442695, %v958_v46  ;;  %v2102_v8 = vmul.f32 -1.442695, %v960_v39 }
 0x21b   : > { %v2347_v3 = vpop.eup %2346  ;;  %2366 = vrcp.f32 %v1074_v53  ;;  %v1076_v4 = vadd.f32 1.0, %v2345_v57  ;;  %v962_v53 = vadd.f32 %v3182_v32, %v3227_v49  ;;  %v2105_v12 = vmul.f32 -1.442695, %v963_v21 }
 0x21c   : > { %v2349_v9 = vpop.eup %2348  ;;  %2368 = vrcp.f32 %v1077_v61  ;;  %v1079_v11 = vadd.f32 1.0, %v2347_v3  ;;  %v2103_v61 = vmul.f32 -1.442695, %v961_v54  ;;  %v965_v3 = vadd.f32 %v3182_v32, %v3229_v60 }
 0x21d   : > { %v2351_v18 = vpop.eup %2350  ;;  %2370 = vrcp.f32 %v1076_v4  ;;  %v1078_v22 = vadd.f32 1.0, %v2349_v9  ;;  %v964_v9 = vadd.f32 %v3182_v32, %v3231_v63 }
 0x21e   : > { %v2353_v26 = vpop.eup %2352  ;;  %2372 = vrcp.f32 %v1079_v11  ;;  %v1081_v20 = vadd.f32 1.0, %v2351_v18 }
 0x21f   : > { %v2355_v24 = vpop.eup %2354  ;;  %2374 = vrcp.f32 %v1078_v22  ;;  %v1080_v38 = vadd.f32 1.0, %v2353_v26  ;;  %v2104_v22 = vmul.f32 -1.442695, %v962_v53  ;;  %v2107_v26 = vmul.f32 -1.442695, %v965_v3 }
 0x220   : > { %v2357_v27 = vpop.eup %2356  ;;  %2376 = vrcp.f32 %v1081_v20  ;;  %v1083_v28 = vadd.f32 1.0, %v2355_v24  ;;  %v2106_v23 = vmul.f32 -1.442695, %v964_v9 }
 0x221   : > { %v2359_v58 = vpop.eup %2358  ;;  %1178 = vperm.xlu1 %2329, %v2357_v27   ;;  %2378 = vrcp.f32 %v1080_v38 }
 0x222   : > { %v2361_v40 = vpop.eup %2360  ;;  %1168 = vperm.xlu0 %2328, %v2359_v58   ;;  %2380 = vrcp.f32 %v1083_v28  ;;  %v966_v28 = vadd.f32 %v3182_v32, %v3240_v1 }
 0x223   : > { %v2363_v25 = vpop.eup %2362  ;;  %2382 = vpow2.f32 %v2096_v42  ;;  %v967_v42 = vadd.f32 %v3182_v32, %v3238_v7 }
 0x224   : > { %v2365_v57 = vpop.eup %2364  ;;  %2384 = vpow2.f32 %v2099_v50 }
 0x225   : > { %v2367_v4 = vpop.eup %2366  ;;  %1183 = vperm.xlu1 %2329, %v2361_v40   ;;  %2386 = vpow2.f32 %v2098_v36  ;;  %v2109_v39 = vmul.f32 -1.442695, %v967_v42  ;;  %v970_v42 = vadd.f32 %v3182_v32, %v3310_v16 }
 0x226   : > { %v2369_v11 = vpop.eup %2368  ;;  %1173 = vperm.xlu0 %2328, %v2363_v25   ;;  %2388 = vpow2.f32 %v2101_v43 }
 0x227   : > { %v2371_v18 = vpop.eup %2370  ;;  %2390 = vpow2.f32 %v2100_v0  ;;  %v2108_v0 = vmul.f32 -1.442695, %v966_v28 }
 0x228   : > { %v2373_v19 = vpop.eup %2372  ;;  %2392 = vpow2.f32 %v2103_v61 }
 0x229   : > { %v2375_v20 = vpop.eup %2374  ;;  %1193 = vperm.xlu1 %2329, %v2365_v57   ;;  %2394 = vpow2.f32 %v2102_v8 }
 0x22a   : > { %v2377_v24 = vpop.eup %2376  ;;  %1188 = vperm.xlu0 %2328, %v2367_v4   ;;  %2396 = vpow2.f32 %v2105_v12  ;;  %v969_v12 = vadd.f32 %v3182_v32, %v3242_v5 }
 0x22b   : > { %v2379_v38 = vpop.eup %2378  ;;  %2398 = vpow2.f32 %v2104_v22 }
 0x22c   : > { %v2381_v46 = vpop.eup %2380  ;;  %2400 = vpow2.f32 %v2107_v26 }
 0x22d   : > { %v2383_v27 = vpop.eup %2382  ;;  %1203 = vperm.xlu1 %2329, %v2369_v11   ;;  %2402 = vpow2.f32 %v2106_v23  ;;  %v971_v23 = vadd.f32 %v3182_v32, %v3308_v15 }
 0x22e   : > { %v2385_v50 = vpop.eup %2384  ;;  %1198 = vperm.xlu0 %2328, %v2371_v18   ;;  %v1082_v54 = vadd.f32 1.0, %v2383_v27  ;;  %v2111_v27 = vmul.f32 -1.442695, %v969_v12 }
 0x22f   : > { %v2387_v58 = vpop.eup %2386  ;;  %v1085_v36 = vadd.f32 1.0, %v2385_v50 }
 0x230   : > { %v2389_v40 = vpop.eup %2388  ;;  %2404 = vrcp.f32 %v1082_v54  ;;  %v1084_v43 = vadd.f32 1.0, %v2387_v58  ;;  %v972_v54 = vadd.f32 %v3182_v32, %v3322_v34 }
 0x231   : > { %v2391_v21 = vpop.eup %2390  ;;  %1213 = vperm.xlu1 %2329, %v2373_v19   ;;  %2406 = vrcp.f32 %v1085_v36  ;;  %v1087_v25 = vadd.f32 1.0, %v2389_v40  ;;  %v968_v19 = vadd.f32 %v3182_v32, %v3306_v13  ;;  %v2113_v36 = vmul.f32 -1.442695, %v971_v23 }
 0x232   : > { %v2393_v53 = vpop.eup %2392  ;;  %1208 = vperm.xlu0 %2328, %v2375_v20   ;;  %2408 = vrcp.f32 %v1084_v43  ;;  %v1086_v57 = vadd.f32 1.0, %v2391_v21  ;;  %v2112_v40 = vmul.f32 -1.442695, %v970_v42 }
 0x233   : > { %v2395_v61 = vpop.eup %2394  ;;  %v1089_v3 = vadd.f32 1.0, %v2393_v53  ;;  %2410 = vpow2.f32 %v2109_v39  ;;  %v2110_v50 = vmul.f32 -1.442695, %v968_v19 }
 0x234   : > { %v2397_v4 = vpop.eup %2396  ;;  %2412 = vrcp.f32 %v1087_v25  ;;  %v1088_v8 = vadd.f32 1.0, %v2395_v61  ;;  %v2114_v25 = vmul.f32 -1.442695, %v972_v54 }
 0x235   : > { %v2399_v9 = vpop.eup %2398  ;;  %1223 = vperm.xlu1 %2329, %v2377_v24   ;;  %v1091_v11 = vadd.f32 1.0, %v2397_v4  ;;  %2414 = vpow2.f32 %v2108_v0 }
 0x236   : > { %v2401_v18 = vpop.eup %2400  ;;  %1218 = vperm.xlu0 %2328, %v2379_v38   ;;  %2416 = vrcp.f32 %v1086_v57  ;;  %v1090_v22 = vadd.f32 1.0, %v2399_v9  ;;  %v973_v38 = vadd.f32 %v3182_v32, %v3320_v30 }
 0x237   : > { %v2403_v26 = vpop.eup %2402  ;;  %2418 = vrcp.f32 %v1089_v3  ;;  %v1093_v20 = vadd.f32 1.0, %v2401_v18 }
 0x238   : > { %2420 = vrcp.f32 %v1088_v8  ;;  %v1092_v24 = vadd.f32 1.0, %v2403_v26 }
 0x239   : > { %1233 = vperm.xlu1 %2329, %v2381_v46   ;;  %2422 = vrcp.f32 %v1091_v11  ;;  %v2115_v46 = vmul.f32 -1.442695, %v973_v38 }
 0x23a   : > { %v2405_v28 = vpop.eup %2404  ;;  %2424 = vrcp.f32 %v1090_v22 }
 0x23b   : > { %v2407_v58 = vpop.eup %2406  ;;  %1228 = vperm.xlu0 %2328, %v2405_v28   ;;  %2426 = vrcp.f32 %v1093_v20 }
 0x23c   : > { %v2409_v39 = vpop.eup %2408  ;;  %2428 = vrcp.f32 %v1092_v24 }
 0x23d   : > { %v2411_v43 = vpop.eup %2410  ;;  %1243 = vperm.xlu1 %2329, %v2407_v58   ;;  %2430 = vpow2.f32 %v2111_v27 }
 0x23e   : > { %v2413_v21 = vpop.eup %2412  ;;  %2432 = vpow2.f32 %v2110_v50  ;;  %v1095_v57 = vadd.f32 1.0, %v2411_v43 }
 0x23f   : > { %v2415_v0 = vpop.eup %2414  ;;  %1238 = vperm.xlu0 %2328, %v2409_v39   ;;  %2434 = vpow2.f32 %v2113_v36 }
 0x240   : > { %v2417_v53 = vpop.eup %2416  ;;  %2436 = vpow2.f32 %v2112_v40  ;;  %v1094_v4 = vadd.f32 1.0, %v2415_v0 }
 0x241   : > { %v2419_v61 = vpop.eup %2418  ;;  %1253 = vperm.xlu1 %2329, %v2413_v21   ;;  %2438 = vpow2.f32 %v2115_v46 }
 0x242   : > { %v2421_v3 = vpop.eup %2420  ;;  %2440 = vpow2.f32 %v2114_v25 }
 0x243   : > { %v2423_v8 = vpop.eup %2422  ;;  %1248 = vperm.xlu0 %2328, %v2417_v53   ;;  %2442 = vrcp.f32 %v1095_v57 }
 0x244   : > { %v2425_v9 = vpop.eup %2424  ;;  %2444 = vrcp.f32 %v1094_v4 }
 0x245   : > { %v2427_v11 = vpop.eup %2426  ;;  %1263 = vperm.xlu1 %2329, %v2419_v61  }
 0x246   : > { %v2429_v12 = vpop.eup %2428 }
 0x247   : > { %v2431_v18 = vpop.eup %2430  ;;  %1258 = vperm.xlu0 %2328, %v2421_v3  }
 0x248   : > { %v2433_v22 = vpop.eup %2432  ;;  %v1097_v19 = vadd.f32 1.0, %v2431_v18 }
 0x249   : > { %v2435_v26 = vpop.eup %2434  ;;  %1273 = vperm.xlu1 %2329, %v2423_v8   ;;  %v1096_v20 = vadd.f32 1.0, %v2433_v22 }
 0x24a   : > { %v2437_v23 = vpop.eup %2436  ;;  %2446 = vrcp.f32 %v1097_v19  ;;  %v1099_v24 = vadd.f32 1.0, %v2435_v26 }
 0x24b   : > { %v2439_v42 = vpop.eup %2438  ;;  %1268 = vperm.xlu0 %2328, %v2425_v9   ;;  %2448 = vrcp.f32 %v1096_v20  ;;  %v1098_v27 = vadd.f32 1.0, %v2437_v23 }
 0x24c   : > { %v2441_v38 = vpop.eup %2440  ;;  %2450 = vrcp.f32 %v1099_v24  ;;  %v1101_v28 = vadd.f32 1.0, %v2439_v42 }
 0x24d   : > { %1283 = vperm.xlu1 %2329, %v2427_v11   ;;  %v2443_v50 = vpop.eup %2442  ;;  %2452 = vrcp.f32 %v1098_v27  ;;  %v1100_v54 = vadd.f32 1.0, %v2441_v38 }
 0x24e   : > { %v2445_v58 = vpop.eup %2444  ;;  %2454 = vrcp.f32 %v1101_v28 }
 0x24f   : > { %1278 = vperm.xlu0 %2328, %v2429_v12   ;;  %2456 = vrcp.f32 %v1100_v54 }
 0x251   : > { %1293 = vperm.xlu1 %2329, %v2443_v50  }
 0x253   : > { %1288 = vperm.xlu0 %2328, %v2445_v58  }
 0x254   : > { %v2447_v36 = vpop.eup %2446 }
 0x255   : > { %v2449_v39 = vpop.eup %2448  ;;  %1303 = vperm.xlu1 %2329, %v2447_v36  }
 0x256   : > { %v2451_v40 = vpop.eup %2450 }
 0x257   : > { %1298 = vperm.xlu0 %2328, %v2449_v39   ;;  %v2453_v43 = vpop.eup %2452 }
 0x258   : > { %v2455_v46 = vpop.eup %2454 }
 0x259   : > { %1313 = vperm.xlu1 %2329, %v2451_v40   ;;  %v2457_v21 = vpop.eup %2456 }
 0x25b   : > { %1308 = vperm.xlu0 %2328, %v2453_v43  }
 0x25d   : > { %1323 = vperm.xlu1 %2329, %v2455_v46  }
 0x25f   : > { %1318 = vperm.xlu0 %2328, %v2457_v21  }
 0x2a0   : > { %v1179_v25 = vpop.permute.xlu1 %1178 }
 0x2a1   : > { %v3369_v0 = vmul.f32 %v1179_v25, %v3168_v62  ;;  %v1169_v53 = vpop.permute.xlu0 %1168 }
 0x2a2   : > { %v3372_v57 = vmul.f32 %v1169_v53, %v3170_v2 }
 0x2a4   : > { %v1184_v61 = vpop.permute.xlu1 %1183 }
 0x2a5   : > { %v3375_v3 = vmul.f32 %v1184_v61, %v3172_v6  ;;  %v1174_v4 = vpop.permute.xlu0 %1173 }
 0x2a6   : > { %v3378_v8 = vmul.f32 %v1174_v4, %v3174_v10 }
 0x2a8   : > { %v1194_v9 = vpop.permute.xlu1 %1193 }
 0x2a9   : > { %v3381_v11 = vmul.f32 %v1194_v9, %v3178_v14  ;;  %v1189_v12 = vpop.permute.xlu0 %1188 }
 0x2aa   : > { %v3384_v62 = vmul.f32 %v1189_v12, %v3180_v31 }
 0x2ac   : > { %v1204_v18 = vpop.permute.xlu1 %1203 }
 0x2ad   : > { %v3387_v2 = vmul.f32 %v1204_v18, %v3184_v35  ;;  %v1199_v22 = vpop.permute.xlu0 %1198 }
 0x2ae   : > { %v3390_v6 = vmul.f32 %v1199_v22, %v3195_v44 }
 0x2b0   : > { %v1214_v19 = vpop.permute.xlu1 %1213 }
 0x2b1   : > { %v3393_v10 = vmul.f32 %v1214_v19, %v3197_v47  ;;  %v1209_v26 = vpop.permute.xlu0 %1208 }
 0x2b2   : > { %v3396_v14 = vmul.f32 %v1209_v26, %v3199_v17 }
 0x2b4   : > { %v1224_v20 = vpop.permute.xlu1 %1223 }
 0x2b5   : > { %v3399_v31 = vmul.f32 %v1224_v20, %v3205_v48  ;;  %v1219_v23 = vpop.permute.xlu0 %1218 }
 0x2b6   : > { %v3402_v35 = vmul.f32 %v1219_v23, %v3207_v51 }
 0x2b8   : > { %v1234_v24 = vpop.permute.xlu1 %1233 }
 0x2b9   : > { %v3405_v44 = vmul.f32 %v1234_v24, %v3209_v52 }
 0x2ba   : > { %v1229_v42 = vpop.permute.xlu0 %1228 }
 0x2bb   : > { %v3408_v47 = vmul.f32 %v1229_v42, %v3211_v29 }
 0x2bc   : > { %v1244_v27 = vpop.permute.xlu1 %1243 }
 0x2bd   : > { %v3411_v17 = vmul.f32 %v1244_v27, %v3213_v33 }
 0x2be   : > { %v1239_v38 = vpop.permute.xlu0 %1238 }
 0x2bf   : > { %v3414_v48 = vmul.f32 %v1239_v38, %v3215_v37 }
 0x2c0   : > { %v1254_v28 = vpop.permute.xlu1 %1253 }
 0x2c1   : > { %v3417_v51 = vmul.f32 %v1254_v28, %v3217_v55 }
 0x2c2   : > { %v1249_v50 = vpop.permute.xlu0 %1248 }
 0x2c3   : > { %v3420_v52 = vmul.f32 %v1249_v50, %v3219_v56 }
 0x2c4   : > { %v1264_v54 = vpop.permute.xlu1 %1263 }
 0x2c5   : > { %v3423_v29 = vmul.f32 %v1264_v54, %v3221_v59 }
 0x2c6   : > { %v1259_v58 = vpop.permute.xlu0 %1258 }
 0x2c7   : > { %v3426_v33 = vmul.f32 %v1259_v58, %v3223_v41 }
 0x2c8   : > { %v1274_v36 = vpop.permute.xlu1 %1273 }
 0x2c9   : > { %v3429_v37 = vmul.f32 %v1274_v36, %v3225_v45 }
 0x2ca   : > { %v1269_v39 = vpop.permute.xlu0 %1268 }
 0x2cb   : > { %3897 = vst [vmem:[#allocation14_spill] sm:$0xff] %v3429_v37  ;;  %v3432_v55 = vmul.f32 %v1269_v39, %v3227_v49 }
 0x2cc   : > { %v1284_v40 = vpop.permute.xlu1 %1283 }
 0x2cd   : > { %3898 = vst [vmem:[#allocation15_spill] sm:$0xff] %v3432_v55  ;;  %v3435_v56 = vmul.f32 %v1284_v40, %v3229_v60 }
 0x2ce   : > { %v1279_v43 = vpop.permute.xlu0 %1278 }
 0x2cf   : > { %3899 = vst [vmem:[#allocation16_spill] sm:$0xff] %v3435_v56  ;;  %v3438_v59 = vmul.f32 %v1279_v43, %v3231_v63 }
 0x2d0   : > { %v1294_v46 = vpop.permute.xlu1 %1293 }
 0x2d1   : > { %3900 = vst [vmem:[#allocation17_spill] sm:$0xff] %v3438_v59  ;;  %v3441_v41 = vmul.f32 %v1294_v46, %v3238_v7 }
 0x2d2   : > { %v1289_v21 = vpop.permute.xlu0 %1288 }
 0x2d3   : > { %3901 = vst [vmem:[#allocation18_spill] sm:$0xff] %v3441_v41  ;;  %v3444_v45 = vmul.f32 %v1289_v21, %v3240_v1 }
 0x2d4   : > { %v1304_v25 = vpop.permute.xlu1 %1303 }
 0x2d5   : > { %3902 = vst [vmem:[#allocation19_spill] sm:$0xff] %v3444_v45  ;;  %v3447_v49 = vmul.f32 %v1304_v25, %v3242_v5 }
 0x2d6   : > { %v1299_v53 = vpop.permute.xlu0 %1298 }
 0x2d7   : > { %3903 = vst [vmem:[#allocation20_spill] sm:$0xff] %v3447_v49  ;;  %v3450_v60 = vmul.f32 %v1299_v53, %v3306_v13 }
 0x2d8   : > { %v1314_v61 = vpop.permute.xlu1 %1313 }
 0x2d9   : > { %3904 = vst [vmem:[#allocation21_spill] sm:$0xff] %v3450_v60  ;;  %v3453_v63 = vmul.f32 %v1314_v61, %v3308_v15 }
 0x2da   : > { %v1309_v4 = vpop.permute.xlu0 %1308 }
 0x2db   : > { %3905 = vst [vmem:[#allocation22_spill] sm:$0xff] %v3453_v63  ;;  %v3456_v7 = vmul.f32 %v1309_v4, %v3310_v16  ;;  %1360 = sbr.rel (%p2116_p7) target bundleno = 963 (0x3c3), region = 60 }
 0x2dc   : > { %v1324_v9 = vpop.permute.xlu1 %1323 }
 0x2dd   : > { %3906 = vst [vmem:[#allocation23_spill] sm:$0xff] %v3456_v7  ;;  %v3459_v1 = vmul.f32 %v1324_v9, %v3320_v30 }
 0x2de   : > { %v1319_v12 = vpop.permute.xlu0 %1318 }
 0x2df   : > { %3907 = vst [vmem:[#allocation24_spill] sm:$0xff] %v3459_v1  ;;  %v3462_v5 = vmul.f32 %v1319_v12, %v3322_v34 }
 0x2e1   : > { %3908 = vst [vmem:[#allocation25_spill] sm:$0xff] %v3462_v5 }
 0x2e2   : > { %v2746_v13 = vmov 32   ;;  %s3466_s29 = scalar_lea.vmem [#allocation8], %s2900_s30  ;;  %s3633_s4 = scalar_lea.vmem [#allocation10], %s2900_s30 }
 0x2e3   : > { %2459 = vset.pattern.permute.xlu1 %v2746_v13  ;;  %2458 = vset.pattern.permute.xlu0 %v2746_v13  ;;  %v3469_v15 = vld [vmem:[%s3466_s29 + $0x10] sm:$0xff]  ;;  %v3472_v16 = vld [vmem:[%s3466_s29] sm:$0xff]  ;;  %v3475_v30 = vld [vmem:[%s3466_s29 + $0x18] sm:$0xff] }
 0x2e4   : > { %v1396_v34 = vadd.f32 %v3469_v15, %v3182_v32  ;;  %v1394_v18 = vadd.f32 %v3472_v16, %v3182_v32  ;;  %v1397_v22 = vadd.f32 %v3475_v30, %v3182_v32  ;;  %v3484_v19 = vld [vmem:[%s3466_s29 + $0x8] sm:$0xff]  ;;  %v3490_v20 = vld [vmem:[%s3466_s29 + $0x20] sm:$0xff]  ;;  %v3499_v27 = vld [vmem:[%s3466_s29 + $0x38] sm:$0xff] }
 0x2e5   : > { %v3487_v26 = vld [vmem:[%s3466_s29 + $0x28] sm:$0xff]  ;;  %v1395_v23 = vadd.f32 %v3484_v19, %v3182_v32  ;;  %v1398_v42 = vadd.f32 %v3490_v20, %v3182_v32  ;;  %v3502_v38 = vld [vmem:[%s3466_s29 + $0x30] sm:$0xff]  ;;  %v1401_v36 = vadd.f32 %v3499_v27, %v3182_v32  ;;  %v3514_v21 = vld [vmem:[%s3466_s29 + $0x40] sm:$0xff] }
 0x2e6   : > { %v1399_v24 = vadd.f32 %v3487_v26, %v3182_v32  ;;  %v3505_v28 = vld [vmem:[%s3466_s29 + $0x48] sm:$0xff]  ;;  %v2119_v50 = vmul.f32 -1.442695, %v1396_v34  ;;  %v2117_v54 = vmul.f32 -1.442695, %v1394_v18  ;;  %v1400_v40 = vadd.f32 %v3502_v38, %v3182_v32  ;;  %v3517_v25 = vld [vmem:[%s3466_s29 + $0x58] sm:$0xff] }
 0x2e7   : > { %v2120_v58 = vmul.f32 -1.442695, %v1397_v22  ;;  %v2118_v39 = vmul.f32 -1.442695, %v1395_v23  ;;  %v1403_v46 = vadd.f32 %v3505_v28, %v3182_v32  ;;  %v3520_v53 = vld [vmem:[%s3466_s29 + $0x50] sm:$0xff]  ;;  %v1402_v4 = vadd.f32 %v3514_v21, %v3182_v32  ;;  %v3525_v9 = vld [vmem:[%s3466_s29 + $0x68] sm:$0xff] }
 0x2e8   : > { %2460 = vpow2.f32 %v2119_v50  ;;  %v2122_v43 = vmul.f32 -1.442695, %v1399_v24  ;;  %v2121_v61 = vmul.f32 -1.442695, %v1398_v42  ;;  %v2124_v12 = vmul.f32 -1.442695, %v1401_v36 }
 0x2e9   : > { %2462 = vpow2.f32 %v2117_v54  ;;  %v1405_v13 = vadd.f32 %v3517_v25, %v3182_v32  ;;  %v2123_v34 = vmul.f32 -1.442695, %v1400_v40  ;;  %v1404_v18 = vadd.f32 %v3520_v53, %v3182_v32  ;;  %v3565_v7 = vld [vmem:[%s3466_s29 + $0xa8] sm:$0xff]  ;;  %v3570_v49 = vld [vmem:[%s3466_s29 + $0xa0] sm:$0xff] }
 0x2ea   : > { %2464 = vpow2.f32 %v2120_v58  ;;  %v2126_v22 = vmul.f32 -1.442695, %v1403_v46  ;;  %v1407_v23 = vadd.f32 %v3525_v9, %v3182_v32  ;;  %v2125_v24 = vmul.f32 -1.442695, %v1402_v4  ;;  %3909 = vst [vmem:[#allocation26_spill] sm:$0xff] %v3565_v7  ;;  %3910 = vst [vmem:[#allocation27_spill] sm:$0xff] %v3570_v49 }
 0x2eb   : > { %2466 = vpow2.f32 %v2118_v39  ;;  %v2128_v42 = vmul.f32 -1.442695, %v1405_v13  ;;  %v2127_v50 = vmul.f32 -1.442695, %v1404_v18  ;;  %v3534_v18 = vld [vmem:[%s3466_s29 + $0x60] sm:$0xff] }
 0x2ec   : > { %2468 = vpow2.f32 %v2122_v43  ;;  %v2130_v54 = vmul.f32 -1.442695, %v1407_v23 }
 0x2ed   : > { %2470 = vpow2.f32 %v2121_v61 }
 0x2ee   : > { %2472 = vpow2.f32 %v2124_v12 }
 0x2ef   : > { %2474 = vpow2.f32 %v2123_v34 }
 0x2f0   : > { %2476 = vpow2.f32 %v2126_v22 }
 0x2f1   : > { %2478 = vpow2.f32 %v2125_v24  ;;  %v3537_v24 = vld [vmem:[%s3466_s29 + $0x78] sm:$0xff] }
 0x2f2   : > { %v2461_v58 = vpop.eup %2460  ;;  %2480 = vpow2.f32 %v2128_v42 }
 0x2f3   : > { %v2463_v36 = vpop.eup %2462  ;;  %v1524_v39 = vadd.f32 1.0, %v2461_v58  ;;  %2482 = vpow2.f32 %v2127_v50 }
 0x2f4   : > { %v2465_v40 = vpop.eup %2464  ;;  %v1522_v43 = vadd.f32 1.0, %v2463_v36  ;;  %2484 = vpow2.f32 %v2130_v54  ;;  %v3540_v54 = vld [vmem:[%s3466_s29 + $0x70] sm:$0xff] }
 0x2f5   : > { %v2467_v46 = vpop.eup %2466  ;;  %2486 = vrcp.f32 %v1524_v39  ;;  %v1525_v61 = vadd.f32 1.0, %v2465_v40  ;;  %v1406_v39 = vadd.f32 %v3534_v18, %v3182_v32  ;;  %v3545_v40 = vld [vmem:[%s3466_s29 + $0x88] sm:$0xff] }
 0x2f6   : > { %v2469_v4 = vpop.eup %2468  ;;  %2488 = vrcp.f32 %v1522_v43  ;;  %v1523_v12 = vadd.f32 1.0, %v2467_v46 }
 0x2f7   : > { %v2471_v13 = vpop.eup %2470  ;;  %2490 = vrcp.f32 %v1525_v61  ;;  %v1527_v34 = vadd.f32 1.0, %v2469_v4  ;;  %v1409_v61 = vadd.f32 %v3537_v24, %v3182_v32  ;;  %v3550_v4 = vld [vmem:[%s3466_s29 + $0x80] sm:$0xff] }
 0x2f8   : > { %v2473_v22 = vpop.eup %2472  ;;  %2492 = vrcp.f32 %v1523_v12  ;;  %v1526_v23 = vadd.f32 1.0, %v2471_v13 }
 0x2f9   : > { %v2475_v42 = vpop.eup %2474  ;;  %2494 = vrcp.f32 %v1527_v34  ;;  %v1529_v50 = vadd.f32 1.0, %v2473_v22  ;;  %v1408_v34 = vadd.f32 %v3540_v54, %v3182_v32  ;;  %v3555_v22 = vld [vmem:[%s3466_s29 + $0x98] sm:$0xff] }
 0x2fa   : > { %v2477_v58 = vpop.eup %2476  ;;  %2496 = vrcp.f32 %v1526_v23  ;;  %v1528_v36 = vadd.f32 1.0, %v2475_v42  ;;  %v1413_v60 = vadd.f32 %v3555_v22, %v3182_v32 }
 0x2fb   : > { %v2479_v43 = vpop.eup %2478  ;;  %2498 = vrcp.f32 %v1529_v50  ;;  %v1531_v46 = vadd.f32 1.0, %v2477_v58  ;;  %v1411_v50 = vadd.f32 %v3545_v40, %v3182_v32  ;;  %v3560_v58 = vld [vmem:[%s3466_s29 + $0x90] sm:$0xff] }
 0x2fc   : > { %v2481_v12 = vpop.eup %2480  ;;  %2500 = vrcp.f32 %v1528_v36  ;;  %v1530_v13 = vadd.f32 1.0, %v2479_v43  ;;  %v2129_v36 = vmul.f32 -1.442695, %v1406_v39  ;;  %v1410_v43 = vadd.f32 %v3550_v4, %v3182_v32 }
 0x2fd   : > { %v2483_v23 = vpop.eup %2482  ;;  %2502 = vrcp.f32 %v1531_v46  ;;  %v1533_v42 = vadd.f32 1.0, %v2481_v12  ;;  %v2132_v12 = vmul.f32 -1.442695, %v1409_v61  ;;  %v1412_v39 = vadd.f32 %v3560_v58, %v3182_v32  ;;  %v3580_v61 = vld [vmem:[%s3466_s29 + $0xb0] sm:$0xff] }
 0x2fe   : > { %v2485_v5 = vpop.eup %2484  ;;  %2504 = vrcp.f32 %v1530_v13  ;;  %v1532_v1 = vadd.f32 1.0, %v2483_v23  ;;  %v2131_v13 = vmul.f32 -1.442695, %v1408_v34  ;;  %v3575_v23 = vld [vmem:[%s3466_s29 + $0xb8] sm:$0xff]  ;;  %v2133_v56 = vmul.f32 -1.442695, %v1410_v43 }
 0x2ff   : > { %v2487_v63 = vpop.eup %2486  ;;  %2506 = vrcp.f32 %v1533_v42  ;;  %v1535_v46 = vadd.f32 1.0, %v2485_v5  ;;  %3911 = vst [vmem:[#allocation28_spill] sm:$0xff] %v3575_v23  ;;  %v2134_v42 = vmul.f32 -1.442695, %v1411_v50  ;;  %v1415_v5 = vadd.f32 %v3565_v7, %v3182_v32 }
 0x300   : > { %v2489_v45 = vpop.eup %2488  ;;  %1630 = vperm.xlu1 %2459, %v2487_v63   ;;  %2508 = vrcp.f32 %v1532_v1  ;;  %v1414_v63 = vadd.f32 %v3570_v49, %v3182_v32  ;;  %v2136_v34 = vmul.f32 -1.442695, %v1413_v60  ;;  %v1417_v55 = vadd.f32 %v3575_v23, %v3182_v32  ;;  %v3589_v23 = vld [vmem:[%s3466_s29 + $0xc8] sm:$0xff] }
 0x301   : > { %v2491_v41 = vpop.eup %2490  ;;  %1620 = vperm.xlu0 %2458, %v2489_v45   ;;  %2510 = vrcp.f32 %v1535_v46  ;;  %v2135_v50 = vmul.f32 -1.442695, %v1412_v39  ;;  %v1416_v46 = vadd.f32 %v3580_v61, %v3182_v32  ;;  %v3592_v39 = vld [vmem:[%s3466_s29 + $0xc0] sm:$0xff] }
 0x302   : > { %v2493_v59 = vpop.eup %2492  ;;  %2512 = vpow2.f32 %v2129_v36  ;;  %v2138_v36 = vmul.f32 -1.442695, %v1415_v5  ;;  %v2140_v49 = vmul.f32 -1.442695, %v1417_v55  ;;  %3912 = vst [vmem:[#allocation29_spill] sm:$0xff] %v3592_v39  ;;  %v1418_v55 = vadd.f32 %v3592_v39, %v3182_v32 }
 0x303   : > { %v2495_v1 = vpop.eup %2494  ;;  %2514 = vpow2.f32 %v2132_v12  ;;  %v2137_v12 = vmul.f32 -1.442695, %v1414_v63 }
 0x304   : > { %v2497_v45 = vpop.eup %2496  ;;  %1635 = vperm.xlu1 %2459, %v2491_v41   ;;  %2516 = vpow2.f32 %v2131_v13  ;;  %v2139_v41 = vmul.f32 -1.442695, %v1416_v46 }
 0x305   : > { %v2499_v37 = vpop.eup %2498  ;;  %1625 = vperm.xlu0 %2458, %v2493_v59   ;;  %2518 = vpow2.f32 %v2134_v42 }
 0x306   : > { %v2501_v43 = vpop.eup %2500  ;;  %2520 = vpow2.f32 %v2133_v56  ;;  %v1419_v56 = vadd.f32 %v3589_v23, %v3182_v32 }
 0x307   : > { %v2503_v60 = vpop.eup %2502  ;;  %2522 = vpow2.f32 %v2136_v34 }
 0x308   : > { %v2505_v7 = vpop.eup %2504  ;;  %1645 = vperm.xlu1 %2459, %v2495_v1   ;;  %2524 = vpow2.f32 %v2135_v50  ;;  %v2142_v50 = vmul.f32 -1.442695, %v1419_v56  ;;  %v3602_v56 = vld [vmem:[%s3466_s29 + $0xd0] sm:$0xff] }
 0x309   : > { %v2507_v13 = vpop.eup %2506  ;;  %1640 = vperm.xlu0 %2458, %v2497_v45   ;;  %2526 = vpow2.f32 %v2138_v36  ;;  %3914 = vst [vmem:[#allocation31_spill] sm:$0xff] %v3602_v56 }
 0x30a   : > { %v2509_v59 = vpop.eup %2508  ;;  %2528 = vpow2.f32 %v2137_v12 }
 0x30b   : > { %v2511_v42 = vpop.eup %2510  ;;  %2530 = vpow2.f32 %v2140_v49  ;;  %v2141_v49 = vmul.f32 -1.442695, %v1418_v55 }
 0x30c   : > { %v2513_v5 = vpop.eup %2512  ;;  %1655 = vperm.xlu1 %2459, %v2499_v37   ;;  %2532 = vpow2.f32 %v2139_v41 }
 0x30d   : > { %v2515_v63 = vpop.eup %2514  ;;  %1650 = vperm.xlu0 %2458, %v2501_v43   ;;  %v1534_v1 = vadd.f32 1.0, %v2513_v5  ;;  %v3599_v5 = vld [vmem:[%s3466_s29 + $0xd8] sm:$0xff] }
 0x30e   : > { %v2517_v34 = vpop.eup %2516  ;;  %v1537_v45 = vadd.f32 1.0, %v2515_v63  ;;  %3913 = vst [vmem:[#allocation30_spill] sm:$0xff] %v3599_v5  ;;  %v1421_v55 = vadd.f32 %v3599_v5, %v3182_v32 }
 0x30f   : > { %v2519_v46 = vpop.eup %2518  ;;  %2534 = vrcp.f32 %v1534_v1  ;;  %v1536_v36 = vadd.f32 1.0, %v2517_v34  ;;  %v3605_v34 = vld [vmem:[%s3466_s29 + $0xe8] sm:$0xff] }
 0x310   : > { %v2521_v12 = vpop.eup %2520  ;;  %1665 = vperm.xlu1 %2459, %v2503_v60   ;;  %2536 = vrcp.f32 %v1537_v45  ;;  %v1539_v37 = vadd.f32 1.0, %v2519_v46  ;;  %3915 = vst [vmem:[#allocation32_spill] sm:$0xff] %v3605_v34  ;;  %v3610_v46 = vld [vmem:[%s3466_s29 + $0xe0] sm:$0xff] }
 0x311   : > { %v2523_v41 = vpop.eup %2522  ;;  %1660 = vperm.xlu0 %2458, %v2505_v7   ;;  %2538 = vrcp.f32 %v1536_v36  ;;  %v1538_v43 = vadd.f32 1.0, %v2521_v12  ;;  %3916 = vst [vmem:[#allocation33_spill] sm:$0xff] %v3610_v46  ;;  %v1420_v12 = vadd.f32 %v3602_v56, %v3182_v32 }
 0x312   : > { %v2525_v39 = vpop.eup %2524  ;;  %v1541_v63 = vadd.f32 1.0, %v2523_v41  ;;  %2540 = vpow2.f32 %v2142_v50 }
 0x313   : > { %v2527_v1 = vpop.eup %2526  ;;  %2542 = vrcp.f32 %v1539_v37  ;;  %v1540_v60 = vadd.f32 1.0, %v2525_v39  ;;  %v3615_v39 = vld [vmem:[%s3466_s29 + $0xf8] sm:$0xff] }
 0x314   : > { %v2529_v45 = vpop.eup %2528  ;;  %1675 = vperm.xlu1 %2459, %v2507_v13   ;;  %v1543_v7 = vadd.f32 1.0, %v2527_v1  ;;  %2544 = vpow2.f32 %v2141_v49  ;;  %3917 = vst [vmem:[#allocation34_spill] sm:$0xff] %v3615_v39  ;;  %v1423_v13 = vadd.f32 %v3605_v34, %v3182_v32  ;;  %v3620_v49 = vld [vmem:[%s3466_s29 + $0xf0] sm:$0xff] }
 0x315   : > { %v2531_v36 = vpop.eup %2530  ;;  %1670 = vperm.xlu0 %2458, %v2509_v59   ;;  %2546 = vrcp.f32 %v1538_v43  ;;  %v1542_v50 = vadd.f32 1.0, %v2529_v45  ;;  %v1422_v59 = vadd.f32 %v3610_v46, %v3182_v32  ;;  %v2144_v43 = vmul.f32 -1.442695, %v1421_v55 }
 0x316   : > { %v2533_v37 = vpop.eup %2532  ;;  %2548 = vrcp.f32 %v1541_v63  ;;  %v1545_v41 = vadd.f32 1.0, %v2531_v36  ;;  %v1425_v45 = vadd.f32 %v3615_v39, %v3182_v32  ;;  %v2143_v63 = vmul.f32 -1.442695, %v1420_v12 }
 0x317   : > { %2550 = vrcp.f32 %v1540_v60  ;;  %v1544_v1 = vadd.f32 1.0, %v2533_v37  ;;  %v1424_v36 = vadd.f32 %v3620_v49, %v3182_v32  ;;  %v2146_v60 = vmul.f32 -1.442695, %v1423_v13 }
 0x318   : > { %1685 = vperm.xlu1 %2459, %v2511_v42   ;;  %2552 = vrcp.f32 %v1543_v7  ;;  %v2145_v5 = vmul.f32 -1.442695, %v1422_v59  ;;  %v2148_v42 = vmul.f32 -1.442695, %v1425_v45 }
 0x319   : > { %v2535_v56 = vpop.eup %2534  ;;  %2554 = vrcp.f32 %v1542_v50  ;;  %v2147_v55 = vmul.f32 -1.442695, %v1424_v36 }
 0x31a   : > { %v2537_v34 = vpop.eup %2536  ;;  %1680 = vperm.xlu0 %2458, %v2535_v56   ;;  %2556 = vrcp.f32 %v1545_v41 }
 0x31b   : > { %v2539_v37 = vpop.eup %2538  ;;  %2558 = vrcp.f32 %v1544_v1 }
 0x31c   : > { %v2541_v46 = vpop.eup %2540  ;;  %1695 = vperm.xlu1 %2459, %v2537_v34   ;;  %2560 = vpow2.f32 %v2144_v43 }
 0x31d   : > { %v2543_v7 = vpop.eup %2542  ;;  %2562 = vpow2.f32 %v2143_v63  ;;  %v1547_v12 = vadd.f32 1.0, %v2541_v46 }
 0x31e   : > { %v2545_v39 = vpop.eup %2544  ;;  %1690 = vperm.xlu0 %2458, %v2539_v37   ;;  %2564 = vpow2.f32 %v2146_v60 }
 0x31f   : > { %v2547_v50 = vpop.eup %2546  ;;  %2566 = vpow2.f32 %v2145_v5  ;;  %v1546_v41 = vadd.f32 1.0, %v2545_v39 }
 0x320   : > { %v2549_v32 = vpop.eup %2548  ;;  %1705 = vperm.xlu1 %2459, %v2543_v7   ;;  %2568 = vpow2.f32 %v2148_v42 }
 0x321   : > { %v2551_v56 = vpop.eup %2550  ;;  %2570 = vpow2.f32 %v2147_v55 }
 0x322   : > { %v2553_v13 = vpop.eup %2552  ;;  %1700 = vperm.xlu0 %2458, %v2547_v50   ;;  %2572 = vrcp.f32 %v1547_v12 }
 0x323   : > { %v2555_v34 = vpop.eup %2554  ;;  %2574 = vrcp.f32 %v1546_v41 }
 0x324   : > { %v2557_v1 = vpop.eup %2556  ;;  %1715 = vperm.xlu1 %2459, %v2549_v32  }
 0x325   : > { %v2559_v59 = vpop.eup %2558 }
 0x326   : > { %v2561_v43 = vpop.eup %2560  ;;  %1710 = vperm.xlu0 %2458, %v2551_v56  }
 0x327   : > { %v2563_v45 = vpop.eup %2562  ;;  %v1549_v63 = vadd.f32 1.0, %v2561_v43 }
 0x328   : > { %v2565_v46 = vpop.eup %2564  ;;  %1725 = vperm.xlu1 %2459, %v2553_v13   ;;  %v1548_v5 = vadd.f32 1.0, %v2563_v45 }
 0x329   : > { %v2567_v36 = vpop.eup %2566  ;;  %2576 = vrcp.f32 %v1549_v63  ;;  %v1551_v60 = vadd.f32 1.0, %v2565_v46 }
 0x32a   : > { %v2569_v39 = vpop.eup %2568  ;;  %1720 = vperm.xlu0 %2458, %v2555_v34   ;;  %2578 = vrcp.f32 %v1548_v5  ;;  %v1550_v37 = vadd.f32 1.0, %v2567_v36 }
 0x32b   : > { %v2571_v42 = vpop.eup %2570  ;;  %2580 = vrcp.f32 %v1551_v60  ;;  %v1553_v7 = vadd.f32 1.0, %v2569_v39 }
 0x32c   : > { %1735 = vperm.xlu1 %2459, %v2557_v1   ;;  %v2573_v55 = vpop.eup %2572  ;;  %2582 = vrcp.f32 %v1550_v37  ;;  %v1552_v50 = vadd.f32 1.0, %v2571_v42 }
 0x32d   : > { %v2575_v12 = vpop.eup %2574  ;;  %2584 = vrcp.f32 %v1553_v7 }
 0x32e   : > { %1730 = vperm.xlu0 %2458, %v2559_v59   ;;  %2586 = vrcp.f32 %v1552_v50 }
 0x330   : > { %1745 = vperm.xlu1 %2459, %v2573_v55  }
 0x332   : > { %1740 = vperm.xlu0 %2458, %v2575_v12  }
 0x333   : > { %v2577_v32 = vpop.eup %2576 }
 0x334   : > { %v2579_v56 = vpop.eup %2578  ;;  %1755 = vperm.xlu1 %2459, %v2577_v32  }
 0x335   : > { %v2581_v41 = vpop.eup %2580 }
 0x336   : > { %1750 = vperm.xlu0 %2458, %v2579_v56   ;;  %v2583_v13 = vpop.eup %2582 }
 0x337   : > { %v2585_v34 = vpop.eup %2584 }
 0x338   : > { %1765 = vperm.xlu1 %2459, %v2581_v41   ;;  %v2587_v1 = vpop.eup %2586 }
 0x33a   : > { %1760 = vperm.xlu0 %2458, %v2583_v13  }
 0x33c   : > { %1775 = vperm.xlu1 %2459, %v2585_v34  }
 0x33e   : > { %1770 = vperm.xlu0 %2458, %v2587_v1  }
 0x37f   : > { %v1631_v43 = vpop.permute.xlu1 %1630 }
 0x380   : > { %v1780_v59 = vmul.f32 %v1631_v43, %v3469_v15  ;;  %v1621_v45 = vpop.permute.xlu0 %1620 }
 0x381   : > { %v1778_v63 = vmul.f32 %v1621_v45, %v3472_v16 }
 0x382   : > { %v1812_v46 = vadd.f32 %v1780_v59, %v3369_v0 }
 0x383   : > { %v1810_v5 = vadd.f32 %v1778_v63, %v3372_v57  ;;  %v1636_v36 = vpop.permute.xlu1 %1635 }
 0x384   : > { %1845 = vst [vmem:[%s3633_s4 + $0x10] sm:$0xff] %v1812_v46  ;;  %v1781_v60 = vmul.f32 %v1636_v36, %v3475_v30  ;;  %v1626_v39 = vpop.permute.xlu0 %1625 }
 0x385   : > { %1843 = vst [vmem:[%s3633_s4] sm:$0xff] %v1810_v5  ;;  %v1779_v15 = vmul.f32 %v1626_v39, %v3484_v19 }
 0x386   : > { %v1813_v16 = vadd.f32 %v1781_v60, %v3375_v3 }
 0x387   : > { %v1811_v37 = vadd.f32 %v1779_v15, %v3378_v8  ;;  %v1646_v42 = vpop.permute.xlu1 %1645 }
 0x388   : > { %1846 = vst [vmem:[%s3633_s4 + $0x18] sm:$0xff] %v1813_v16  ;;  %v1783_v7 = vmul.f32 %v1646_v42, %v3487_v26  ;;  %v1641_v55 = vpop.permute.xlu0 %1640 }
 0x389   : > { %1844 = vst [vmem:[%s3633_s4 + $0x8] sm:$0xff] %v1811_v37  ;;  %v1782_v50 = vmul.f32 %v1641_v55, %v3490_v20 }
 0x38a   : > { %v1815_v30 = vadd.f32 %v1783_v7, %v3381_v11 }
 0x38b   : > { %v1814_v12 = vadd.f32 %v1782_v50, %v3384_v62  ;;  %v1656_v32 = vpop.permute.xlu1 %1655 }
 0x38c   : > { %1848 = vst [vmem:[%s3633_s4 + $0x28] sm:$0xff] %v1815_v30  ;;  %v1785_v19 = vmul.f32 %v1656_v32, %v3499_v27  ;;  %v1651_v56 = vpop.permute.xlu0 %1650 }
 0x38d   : > { %1847 = vst [vmem:[%s3633_s4 + $0x20] sm:$0xff] %v1814_v12  ;;  %v1784_v41 = vmul.f32 %v1651_v56, %v3502_v38 }
 0x38e   : > { %v1817_v26 = vadd.f32 %v1785_v19, %v3387_v2 }
 0x38f   : > { %v1816_v13 = vadd.f32 %v1784_v41, %v3390_v6  ;;  %v1666_v34 = vpop.permute.xlu1 %1665 }
 0x390   : > { %1850 = vst [vmem:[%s3633_s4 + $0x38] sm:$0xff] %v1817_v26  ;;  %v1787_v20 = vmul.f32 %v1666_v34, %v3505_v28  ;;  %v1661_v1 = vpop.permute.xlu0 %1660 }
 0x391   : > { %1849 = vst [vmem:[%s3633_s4 + $0x30] sm:$0xff] %v1816_v13  ;;  %v1786_v43 = vmul.f32 %v1661_v1, %v3514_v21 }
 0x392   : > { %v1819_v27 = vadd.f32 %v1787_v20, %v3393_v10  ;;  %v3919_v20 = vld [vmem:[#allocation14_spill] sm:$0xff] }
 0x393   : > { %v1818_v59 = vadd.f32 %v1786_v43, %v3396_v14  ;;  %v1676_v45 = vpop.permute.xlu1 %1675 }
 0x394   : > { %1852 = vst [vmem:[%s3633_s4 + $0x48] sm:$0xff] %v1819_v27  ;;  %v1789_v38 = vmul.f32 %v1676_v45, %v3517_v25  ;;  %v1671_v63 = vpop.permute.xlu0 %1670 }
 0x395   : > { %1851 = vst [vmem:[%s3633_s4 + $0x40] sm:$0xff] %v1818_v59  ;;  %v1788_v46 = vmul.f32 %v1671_v63, %v3520_v53  ;;  %v3921_v59 = vld [vmem:[#allocation15_spill] sm:$0xff] }
 0x396   : > { %v1821_v28 = vadd.f32 %v1789_v38, %v3399_v31 }
 0x397   : > { %v1820_v5 = vadd.f32 %v1788_v46, %v3402_v35  ;;  %v1686_v36 = vpop.permute.xlu1 %1685  ;;  %v3923_v46 = vld [vmem:[#allocation16_spill] sm:$0xff] }
 0x398   : > { %1854 = vst [vmem:[%s3633_s4 + $0x58] sm:$0xff] %v1821_v28  ;;  %v1791_v21 = vmul.f32 %v1686_v36, %v3525_v9 }
 0x399   : > { %1853 = vst [vmem:[%s3633_s4 + $0x50] sm:$0xff] %v1820_v5  ;;  %v1681_v60 = vpop.permute.xlu0 %1680 }
 0x39a   : > { %v1823_v39 = vadd.f32 %v1791_v21, %v3405_v44  ;;  %v1790_v25 = vmul.f32 %v1681_v60, %v3534_v18  ;;  %v3924_v21 = vld [vmem:[#allocation17_spill] sm:$0xff] }
 0x39b   : > { %v1696_v15 = vpop.permute.xlu1 %1695 }
 0x39c   : > { %1856 = vst [vmem:[%s3633_s4 + $0x68] sm:$0xff] %v1823_v39  ;;  %v1822_v53 = vadd.f32 %v1790_v25, %v3408_v47  ;;  %v1793_v16 = vmul.f32 %v1696_v15, %v3537_v24  ;;  %v3925_v15 = vld [vmem:[#allocation18_spill] sm:$0xff] }
 0x39d   : > { %v1691_v37 = vpop.permute.xlu0 %1690 }
 0x39e   : > { %1855 = vst [vmem:[%s3633_s4 + $0x60] sm:$0xff] %v1822_v53  ;;  %v1825_v42 = vadd.f32 %v1793_v16, %v3411_v17  ;;  %v1792_v9 = vmul.f32 %v1691_v37, %v3540_v54  ;;  %v3926_v16 = vld [vmem:[#allocation29_spill] sm:$0xff] }
 0x39f   : > { %v1706_v7 = vpop.permute.xlu1 %1705 }
 0x3a0   : > { %1858 = vst [vmem:[%s3633_s4 + $0x78] sm:$0xff] %v1825_v42  ;;  %v1824_v55 = vadd.f32 %v1792_v9, %v3414_v48  ;;  %v1795_v18 = vmul.f32 %v1706_v7, %v3545_v40  ;;  %v3927_v9 = vld [vmem:[#allocation19_spill] sm:$0xff] }
 0x3a1   : > { %v1701_v50 = vpop.permute.xlu0 %1700 }
 0x3a2   : > { %1857 = vst [vmem:[%s3633_s4 + $0x70] sm:$0xff] %v1824_v55  ;;  %v1827_v30 = vadd.f32 %v1795_v18, %v3417_v51  ;;  %v1794_v24 = vmul.f32 %v1701_v50, %v3550_v4  ;;  %v3918_v4 = vld [vmem:[#allocation26_spill] sm:$0xff]  ;;  %v3929_v50 = vld [vmem:[#allocation20_spill] sm:$0xff] }
 0x3a3   : > { %v1716_v12 = vpop.permute.xlu1 %1715 }
 0x3a4   : > { %1860 = vst [vmem:[%s3633_s4 + $0x88] sm:$0xff] %v1827_v30  ;;  %v1826_v32 = vadd.f32 %v1794_v24, %v3420_v52  ;;  %v1797_v54 = vmul.f32 %v1716_v12, %v3555_v22  ;;  %v3920_v22 = vld [vmem:[#allocation27_spill] sm:$0xff] }
 0x3a5   : > { %v1711_v19 = vpop.permute.xlu0 %1710 }
 0x3a6   : > { %1859 = vst [vmem:[%s3633_s4 + $0x80] sm:$0xff] %v1826_v32  ;;  %v1829_v56 = vadd.f32 %v1797_v54, %v3423_v29  ;;  %v1796_v40 = vmul.f32 %v1711_v19, %v3560_v58  ;;  %v3922_v58 = vld [vmem:[#allocation28_spill] sm:$0xff]  ;;  %v3931_v32 = vld [vmem:[#allocation21_spill] sm:$0xff] }
 0x3a7   : > { %v1726_v41 = vpop.permute.xlu1 %1725  ;;  %v3932_v19 = vld [vmem:[#allocation32_spill] sm:$0xff] }
 0x3a8   : > { %1862 = vst [vmem:[%s3633_s4 + $0x98] sm:$0xff] %v1829_v56  ;;  %v1828_v26 = vadd.f32 %v1796_v40, %v3426_v33  ;;  %v1799_v13 = vmul.f32 %v1726_v41, %v3918_v4  ;;  %v3933_v41 = vld [vmem:[#allocation22_spill] sm:$0xff]  ;;  %v3934_v4 = vld [vmem:[#allocation33_spill] sm:$0xff] }
 0x3a9   : > { %v1721_v34 = vpop.permute.xlu0 %1720 }
 0x3aa   : > { %1861 = vst [vmem:[%s3633_s4 + $0x90] sm:$0xff] %v1828_v26  ;;  %v1831_v1 = vadd.f32 %v1799_v13, %v3919_v20  ;;  %v1798_v43 = vmul.f32 %v1721_v34, %v3920_v22  ;;  %v3935_v20 = vld [vmem:[#allocation23_spill] sm:$0xff]  ;;  %v3936_v22 = vld [vmem:[#allocation34_spill] sm:$0xff] }
 0x3ab   : > { %v1736_v27 = vpop.permute.xlu1 %1735 }
 0x3ac   : > { %1864 = vst [vmem:[%s3633_s4 + $0xa8] sm:$0xff] %v1831_v1  ;;  %v1830_v45 = vadd.f32 %v1798_v43, %v3921_v59  ;;  %v1801_v38 = vmul.f32 %v1736_v27, %v3922_v58  ;;  %v3937_v59 = vld [vmem:[#allocation24_spill] sm:$0xff] }
 0x3ad   : > { %v1731_v63 = vpop.permute.xlu0 %1730 }
 0x3ae   : > { %1863 = vst [vmem:[%s3633_s4 + $0xa0] sm:$0xff] %v1830_v45  ;;  %v1833_v28 = vadd.f32 %v1801_v38, %v3923_v46  ;;  %v1800_v5 = vmul.f32 %v1731_v63, %v3580_v61  ;;  %v3928_v61 = vld [vmem:[#allocation30_spill] sm:$0xff]  ;;  %v3938_v38 = vld [vmem:[#allocation25_spill] sm:$0xff] }
 0x3af   : > { %v1746_v36 = vpop.permute.xlu1 %1745 }
 0x3b0   : > { %1866 = vst [vmem:[%s3633_s4 + $0xb8] sm:$0xff] %v1833_v28  ;;  %v1832_v60 = vadd.f32 %v1800_v5, %v3924_v21  ;;  %v1803_v39 = vmul.f32 %v1746_v36, %v3589_v23  ;;  %v3930_v23 = vld [vmem:[#allocation31_spill] sm:$0xff] }
 0x3b1   : > { %v1741_v25 = vpop.permute.xlu0 %1740 }
 0x3b2   : > { %1865 = vst [vmem:[%s3633_s4 + $0xb0] sm:$0xff] %v1832_v60  ;;  %v1835_v53 = vadd.f32 %v1803_v39, %v3925_v15  ;;  %v1802_v37 = vmul.f32 %v1741_v25, %v3926_v16 }
 0x3b3   : > { %v1756_v42 = vpop.permute.xlu1 %1755 }
 0x3b4   : > { %1868 = vst [vmem:[%s3633_s4 + $0xc8] sm:$0xff] %v1835_v53  ;;  %v1834_v7 = vadd.f32 %v1802_v37, %v3927_v9  ;;  %v1805_v55 = vmul.f32 %v1756_v42, %v3928_v61 }
 0x3b5   : > { %v1751_v18 = vpop.permute.xlu0 %1750 }
 0x3b6   : > { %1867 = vst [vmem:[%s3633_s4 + $0xc0] sm:$0xff] %v1834_v7  ;;  %v1837_v30 = vadd.f32 %v1805_v55, %v3929_v50  ;;  %v1804_v24 = vmul.f32 %v1751_v18, %v3930_v23 }
 0x3b7   : > { %v1766_v12 = vpop.permute.xlu1 %1765 }
 0x3b8   : > { %1870 = vst [vmem:[%s3633_s4 + $0xd8] sm:$0xff] %v1837_v30  ;;  %v1836_v54 = vadd.f32 %v1804_v24, %v3931_v32  ;;  %v1807_v56 = vmul.f32 %v1766_v12, %v3932_v19 }
 0x3b9   : > { %v1761_v40 = vpop.permute.xlu0 %1760 }
 0x3ba   : > { %1869 = vst [vmem:[%s3633_s4 + $0xd0] sm:$0xff] %v1836_v54  ;;  %v1839_v26 = vadd.f32 %v1807_v56, %v3933_v41  ;;  %v1806_v13 = vmul.f32 %v1761_v40, %v3934_v4 }
 0x3bb   : > { %v1776_v34 = vpop.permute.xlu1 %1775 }
 0x3bc   : > { %1872 = vst [vmem:[%s3633_s4 + $0xe8] sm:$0xff] %v1839_v26  ;;  %v1838_v1 = vadd.f32 %v1806_v13, %v3935_v20  ;;  %v1809_v43 = vmul.f32 %v1776_v34, %v3936_v22 }
 0x3bd   : > { %v1771_v27 = vpop.permute.xlu0 %1770 }
 0x3be   : > { %1871 = vst [vmem:[%s3633_s4 + $0xe0] sm:$0xff] %v1838_v1  ;;  %v1841_v45 = vadd.f32 %v1809_v43, %v3937_v59  ;;  %v1808_v58 = vmul.f32 %v1771_v27, %v3620_v49 }
 0x3c0   : > { %1874 = vst [vmem:[%s3633_s4 + $0xf8] sm:$0xff] %v1841_v45  ;;  %v1840_v63 = vadd.f32 %v1808_v58, %v3938_v38 }
 0x3c2   : > { %1873 = vst [vmem:[%s3633_s4 + $0xf0] sm:$0xff] %v1840_v63 }
 0x3c3 PF: > { %p2149_p4 = scmp.le.s32.totalorder %s2720_s16, 0 }
 0x3c4   : > { %s3729_s5 = scalar_lea.vmem (!%p2149_p4), [#allocation10], %s2900_s30  ;;  %v3939_v54 = vld [vmem:[#allocation15_spill] sm:$0xff] (!%p2149_p4)  ;;  %v3940_v40 = vld [vmem:[#allocation14_spill] sm:$0xff] (!%p2149_p4)  ;;  %v3941_v26 = vld [vmem:[#allocation17_spill] sm:$0xff] (!%p2149_p4) }
 0x3c5   : > { %1878 = sbr.rel (%p2149_p4) target bundleno = 989 (0x3dd), region = 64  ;;  %v3942_v4 = vld [vmem:[#allocation16_spill] sm:$0xff] (!%p2149_p4)  ;;  %v3943_v1 = vld [vmem:[#allocation19_spill] sm:$0xff] (!%p2149_p4)  ;;  %v3944_v43 = vld [vmem:[#allocation18_spill] sm:$0xff] (!%p2149_p4) }
 0x3c6   : > { %v3945_v59 = vld [vmem:[#allocation21_spill] sm:$0xff] (!%p2149_p4) }
 0x3c9   : > { %v1880_v49 = vld [vmem:[%s3729_s5] sm:$0xff] (!%p2149_p4)  ;;  %v1881_v46 = vld [vmem:[%s3729_s5 + $0x8] sm:$0xff] (!%p2149_p4)  ;;  %v1882_v28 = vld [vmem:[%s3729_s5 + $0x10] sm:$0xff] (!%p2149_p4) }
 0x3ca   : > { %v1912_v5 = vadd.f32 (!%p2149_p4), %v1880_v49, %v3372_v57  ;;  %v1913_v36 = vadd.f32 (!%p2149_p4), %v1881_v46, %v3378_v8  ;;  %v1914_v21 = vadd.f32 (!%p2149_p4), %v1882_v28, %v3369_v0  ;;  %v1883_v60 = vld [vmem:[%s3729_s5 + $0x18] sm:$0xff] (!%p2149_p4)  ;;  %v1884_v39 = vld [vmem:[%s3729_s5 + $0x20] sm:$0xff] (!%p2149_p4)  ;;  %v1885_v25 = vld [vmem:[%s3729_s5 + $0x28] sm:$0xff] (!%p2149_p4) }
 0x3cb   : > { %v1915_v15 = vadd.f32 (!%p2149_p4), %v1883_v60, %v3375_v3  ;;  %v1916_v53 = vadd.f32 (!%p2149_p4), %v1884_v39, %v3384_v62  ;;  %v1917_v16 = vadd.f32 (!%p2149_p4), %v1885_v25, %v3381_v11  ;;  %v1886_v57 = vld [vmem:[%s3729_s5 + $0x30] sm:$0xff] (!%p2149_p4)  ;;  %v1887_v37 = vld [vmem:[%s3729_s5 + $0x38] sm:$0xff] (!%p2149_p4)  ;;  %v1888_v8 = vld [vmem:[%s3729_s5 + $0x40] sm:$0xff] (!%p2149_p4) }
 0x3cc   : > { %1944 = vst [vmem:[%s3729_s5] sm:$0xff] %v1912_v5  ;;  %1945 = vst [vmem:[%s3729_s5 + $0x8] sm:$0xff] %v1913_v36  ;;  %v1918_v0 = vadd.f32 %v1886_v57, %v3390_v6  ;;  %v1919_v3 = vadd.f32 %v1887_v37, %v3387_v2  ;;  %v1920_v62 = vadd.f32 %v1888_v8, %v3396_v14  ;;  %v1889_v42 = vld [vmem:[%s3729_s5 + $0x48] sm:$0xff]  ;;  %v1890_v11 = vld [vmem:[%s3729_s5 + $0x50] sm:$0xff] }
 0x3cd   : > { %1946 = vst [vmem:[%s3729_s5 + $0x10] sm:$0xff] %v1914_v21  ;;  %v1891_v9 = vld [vmem:[%s3729_s5 + $0x58] sm:$0xff]  ;;  %1947 = vst [vmem:[%s3729_s5 + $0x18] sm:$0xff] %v1915_v15  ;;  %v1921_v7 = vadd.f32 %v1889_v42, %v3393_v10  ;;  %v1922_v6 = vadd.f32 %v1890_v11, %v3402_v35  ;;  %v1892_v61 = vld [vmem:[%s3729_s5 + $0x60] sm:$0xff] }
 0x3ce   : > { %1948 = vst [vmem:[%s3729_s5 + $0x20] sm:$0xff] %v1916_v53  ;;  %1949 = vst [vmem:[%s3729_s5 + $0x28] sm:$0xff] %v1917_v16  ;;  %v1923_v2 = vadd.f32 %v1891_v9, %v3399_v31  ;;  %v1893_v14 = vld [vmem:[%s3729_s5 + $0x68] sm:$0xff]  ;;  %v1894_v55 = vld [vmem:[%s3729_s5 + $0x70] sm:$0xff]  ;;  %v1924_v18 = vadd.f32 %v1892_v61, %v3408_v47 }
 0x3cf   : > { %1950 = vst [vmem:[%s3729_s5 + $0x30] sm:$0xff] %v1918_v0  ;;  %1951 = vst [vmem:[%s3729_s5 + $0x38] sm:$0xff] %v1919_v3  ;;  %v1925_v10 = vadd.f32 %v1893_v14, %v3405_v44  ;;  %v1926_v35 = vadd.f32 %v1894_v55, %v3414_v48  ;;  %v1895_v50 = vld [vmem:[%s3729_s5 + $0x78] sm:$0xff]  ;;  %v1896_v31 = vld [vmem:[%s3729_s5 + $0x80] sm:$0xff] }
 0x3d0   : > { %1952 = vst [vmem:[%s3729_s5 + $0x40] sm:$0xff] %v1920_v62  ;;  %v1897_v30 = vld [vmem:[%s3729_s5 + $0x88] sm:$0xff]  ;;  %1953 = vst [vmem:[%s3729_s5 + $0x48] sm:$0xff] %v1921_v7  ;;  %v1927_v23 = vadd.f32 %v1895_v50, %v3411_v17  ;;  %v1928_v47 = vadd.f32 %v1896_v31, %v3420_v52  ;;  %v1898_v24 = vld [vmem:[%s3729_s5 + $0x90] sm:$0xff] }
 0x3d1   : > { %1954 = vst [vmem:[%s3729_s5 + $0x50] sm:$0xff] %v1922_v6  ;;  %1955 = vst [vmem:[%s3729_s5 + $0x58] sm:$0xff] %v1923_v2  ;;  %v1929_v44 = vadd.f32 %v1897_v30, %v3417_v51  ;;  %v1899_v48 = vld [vmem:[%s3729_s5 + $0x98] sm:$0xff]  ;;  %v1900_v12 = vld [vmem:[%s3729_s5 + $0xa0] sm:$0xff]  ;;  %v1930_v32 = vadd.f32 %v1898_v24, %v3426_v33 }
 0x3d2   : > { %1956 = vst [vmem:[%s3729_s5 + $0x60] sm:$0xff] %v1924_v18  ;;  %1957 = vst [vmem:[%s3729_s5 + $0x68] sm:$0xff] %v1925_v10  ;;  %v1931_v17 = vadd.f32 %v1899_v48, %v3423_v29  ;;  %v1932_v52 = vadd.f32 %v1900_v12, %v3939_v54  ;;  %v1901_v19 = vld [vmem:[%s3729_s5 + $0xa8] sm:$0xff]  ;;  %v1902_v51 = vld [vmem:[%s3729_s5 + $0xb0] sm:$0xff] }
 0x3d3   : > { %1958 = vst [vmem:[%s3729_s5 + $0x70] sm:$0xff] %v1926_v35  ;;  %v1903_v56 = vld [vmem:[%s3729_s5 + $0xb8] sm:$0xff]  ;;  %1959 = vst [vmem:[%s3729_s5 + $0x78] sm:$0xff] %v1927_v23  ;;  %v1933_v41 = vadd.f32 %v1901_v19, %v3940_v40  ;;  %v1934_v33 = vadd.f32 %v1902_v51, %v3941_v26  ;;  %v1904_v13 = vld [vmem:[%s3729_s5 + $0xc0] sm:$0xff] }
 0x3d4   : > { %1960 = vst [vmem:[%s3729_s5 + $0x80] sm:$0xff] %v1928_v47  ;;  %1961 = vst [vmem:[%s3729_s5 + $0x88] sm:$0xff] %v1929_v44  ;;  %v1935_v29 = vadd.f32 %v1903_v56, %v3942_v4  ;;  %v1905_v34 = vld [vmem:[%s3729_s5 + $0xc8] sm:$0xff]  ;;  %v1906_v20 = vld [vmem:[%s3729_s5 + $0xd0] sm:$0xff]  ;;  %v1936_v22 = vadd.f32 %v1904_v13, %v3943_v1 }
 0x3d5   : > { %1962 = vst [vmem:[%s3729_s5 + $0x90] sm:$0xff] %v1930_v32  ;;  %1963 = vst [vmem:[%s3729_s5 + $0x98] sm:$0xff] %v1931_v17  ;;  %v1937_v27 = vadd.f32 %v1905_v34, %v3944_v43  ;;  %v1938_v45 = vadd.f32 %v1906_v20, %v3945_v59  ;;  %v1907_v58 = vld [vmem:[%s3729_s5 + $0xd8] sm:$0xff]  ;;  %v1908_v38 = vld [vmem:[%s3729_s5 + $0xe0] sm:$0xff] }
 0x3d6   : > { %1964 = vst [vmem:[%s3729_s5 + $0xa0] sm:$0xff] %v1932_v52  ;;  %v1909_v63 = vld [vmem:[%s3729_s5 + $0xe8] sm:$0xff]  ;;  %1965 = vst [vmem:[%s3729_s5 + $0xa8] sm:$0xff] %v1933_v41  ;;  %v3946_v49 = vld [vmem:[#allocation20_spill] sm:$0xff] }
 0x3d7   : > { %1966 = vst [vmem:[%s3729_s5 + $0xb0] sm:$0xff] %v1934_v33  ;;  %1967 = vst [vmem:[%s3729_s5 + $0xb8] sm:$0xff] %v1935_v29  ;;  %v1939_v46 = vadd.f32 %v1907_v58, %v3946_v49  ;;  %v3947_v28 = vld [vmem:[#allocation23_spill] sm:$0xff]  ;;  %v3948_v36 = vld [vmem:[#allocation22_spill] sm:$0xff] }
 0x3d8   : > { %v1940_v5 = vadd.f32 %v1908_v38, %v3947_v28  ;;  %v1941_v21 = vadd.f32 %v1909_v63, %v3948_v36  ;;  %v1910_v60 = vld [vmem:[%s3729_s5 + $0xf0] sm:$0xff]  ;;  %v1911_v39 = vld [vmem:[%s3729_s5 + $0xf8] sm:$0xff]  ;;  %1968 = vst [vmem:[%s3729_s5 + $0xc0] sm:$0xff] %v1936_v22  ;;  %1969 = vst [vmem:[%s3729_s5 + $0xc8] sm:$0xff] %v1937_v27 }
 0x3d9   : > { %1970 = vst [vmem:[%s3729_s5 + $0xd0] sm:$0xff] %v1938_v45  ;;  %v3949_v25 = vld [vmem:[#allocation25_spill] sm:$0xff]  ;;  %v3950_v53 = vld [vmem:[#allocation24_spill] sm:$0xff]  ;;  %1971 = vst [vmem:[%s3729_s5 + $0xd8] sm:$0xff] %v1939_v46 }
 0x3da   : > { %v1942_v15 = vadd.f32 %v1910_v60, %v3949_v25  ;;  %v1943_v16 = vadd.f32 %v1911_v39, %v3950_v53  ;;  %1972 = vst [vmem:[%s3729_s5 + $0xe0] sm:$0xff] %v1940_v5  ;;  %1973 = vst [vmem:[%s3729_s5 + $0xe8] sm:$0xff] %v1941_v21 }
 0x3dc   : > { %1974 = vst [vmem:[%s3729_s5 + $0xf0] sm:$0xff] %v1942_v15  ;;  %1975 = vst [vmem:[%s3729_s5 + $0xf8] sm:$0xff] %v1943_v16 }
 0x3dd PF: > { %p3829_p5 = scmp.eq.s32.totalorder %s2068_s2, 26  ;;  %s2747_s30 = smov [#allocation10]  }
 0x3de   : > { %s1982_s6 = sshll.u32 %s2747_s30, 4  ;;  %s1983_s6 = int_to_ptr.vmem [resolvable:$true] %s1982_s6 }
 0x3df   : > { %s2644_s7 = scalar_lea.vmem %s1983_s6, 12288  ;;  %p2651_p11 = scmp.lt.s32.totalorder %s1983_s6, %s1983_s6 }
 0x3e0   : > { %p2645_p10 = scmp.ne.s32.totalorder %s1983_s6, %s2644_s7  ;;  %p2652_p12 = scmp.lt.s32.totalorder %s2644_s7, %s2644_s7 }
 0x3e2   : > { %p2646_p8 = pnand %p2645_p10, %p3829_p5  ;;  %p2653_p13 = por %p2652_p12, %p2651_p11 }
 0x3e4   : > { %p2647_p9 = pneg %p2646_p8 }
 0x3e6   : > { %p2654_p0 = pnand %p2653_p13, %p2647_p9 }
 0x3e8   : > { %2657 = shalt.err (!%p2654_p0)
}
 0x3e9   : > { %s2658_s2 = scalar_lea.hbm %s3879_s3, 12288 }
 0x3ea   : > { %p2659_p1 = scmp.ne.s32.totalorder %s3879_s3, %s2658_s2  ;;  %p2664_p6 = scmp.lt.u32.totalorder %s2658_s2, %s3879_s3 }
 0x3ec   : > { %p2660_p2 = pnand %p2659_p1, %p3829_p5 }
 0x3ee   : > { %p2661_p3 = pneg %p2660_p2 }
 0x3f0   : > { %p2666_p7 = pnand %p2664_p6, %p2661_p3 }
 0x3f2   : > { %2669 = shalt.err (!%p2666_p7)
}
 0x3f3   : > { %s2748_s12 = smov 128   ;;  %s2749_s13 = smov 8  }
 0x3f4   : > { %2244 = dma.vmem_to_hbm [thread:$0]  (%p3829_p5), %s1983_s6, 12288, %s3879_s3, [#allocation7], %s2748_s12, %s2748_s12, %s2749_s13  }
 0x3f5   : > { %2707 = dma.done.wait (%p3829_p5), [#allocation7], 12288  }
 0x3f6   : > { %2709 = vsyncadd (%p3829_p5), [#allocation7], 4294955008 }
 0x3f7 PF: > { %s17_s20 = sadd.s32 1, %s2736_s20   ;;  %s3952_s14 = smov %s2724_s17 }
 0x3f8   : > { %p14_p4 = scmp.ge.s32.totalorder %s17_s20, 29   ;;  %s3953_s15 = smov %s2728_s18 }
 0x3f9   : > { %s3954_s16 = smov %s2732_s19  ;;  %s3955_s17 = smov %s3959_s21 }
 0x3fa   : > { %s3956_s18 = smov %s3963_s22  ;;  %s3957_s19 = smov %s3967_s23 }
 0x3fb   :  { %16 = sbr.rel (!%p14_p4) target bundleno = 8 (0x8), region = 95 }
 0x402   :  { %1998 = vsyncpa [#allocation6], 1 }
 0x403   :  { %2000 = vsyncpa [#allocation6 + $0x1], 1 }
 0x404   :  { %2001 = vsyncpa [#allocation9], 1 }
 0x405   :  { %2002 = vsyncpa [#allocation7], 1 }
 0x406   :  { %2004 = vsyncpa [#allocation7 + $0x1], 1 }

</bundles_post_ra>
